<compile_context>
chip_gen: v7x
topology: tpu7x:2x2x1
jax: 0.10.0
libtpu: 0.0.40
codegen_flags: <defaults>
</compile_context>

<pallas_src>
import functools
import math

import numpy as np

import jax
import jax.numpy as jnp
from jax import lax
from jax.experimental import pallas as pl
from jax.experimental.pallas import tpu as pltpu

NUM_GROUPS = 32   # Normalize() -> GroupNorm(num_groups=32, eps=1e-6, affine=True)
EPS = 1e-6


def _swish(x):
    # nonlinearity(x) = x * sigmoid(x)
    return x * jax.nn.sigmoid(x)


def _group_norm_seg(x, gamma, beta, Ablk, Atblk, S, St, inv_n):
    """GroupNorm on a (C, lanes) tile where lanes = n_segments * L.

    Per-(group, segment) statistics:
      S  (lanes, nseg): reduces lanes to per-segment sums.
      Ablk  (2G, 2C) = blockdiag(A, A): reduces [sum; sumsq] to group space.
      Atblk (2C, 2G): broadcasts [mean; rsqrt(var)] back to channel space.
      St (nseg, lanes): broadcasts per-segment scale/shift back to lanes.
    """
    C = x.shape[0]
    G = Atblk.shape[1] // 2
    s_cb = jnp.dot(x, S, preferred_element_type=jnp.float32)        # (C, nseg)
    s2_cb = jnp.dot(x * x, S, preferred_element_type=jnp.float32)   # (C, nseg)
    stats = jnp.concatenate([s_cb, s2_cb], axis=0)                   # (2C, nseg)
    gstats = jnp.dot(Ablk, stats,
                     preferred_element_type=jnp.float32) * inv_n     # (2G, nseg)
    gmean = gstats[:G]
    gvar = jnp.maximum(gstats[G:] - gmean * gmean, 0.0)              # clamp cancellation
    ginv = lax.rsqrt(gvar + EPS)
    cstats = jnp.dot(Atblk, jnp.concatenate([gmean, ginv], axis=0),
                     preferred_element_type=jnp.float32)             # (2C, nseg)
    mean_cb = cstats[:C]
    inv_cb = cstats[C:]
    scale_cb = inv_cb * gamma                                        # (C, nseg)
    shift_cb = beta - mean_cb * scale_cb
    ss = jnp.dot(jnp.concatenate([scale_cb, shift_cb], axis=0), St,
                 preferred_element_type=jnp.float32)                 # (2C, lanes)
    return x * ss[:C] + ss[C:]


def _conv3_fused(h, w_fused, bias, mask_first, mask_last):
    """kernel_size=3, stride=1, padding=1 conv (per batch segment) as one dot.

    w_fused: (C_out, 3*C_in) bf16 with tap-major blocks [w_tap0 | w_tap1 | w_tap2].
    tap0 multiplies x[l-1], tap2 multiplies x[l+1]; the shifted operands come
    from pltpu.roll (XLU) and the segment-boundary lanes are zeroed with
    precomputed masks, reproducing nn.Conv1d's zero padding per batch element.
    """
    lanes = h.shape[1]
    h_prev = pltpu.roll(h, 1, axis=1) * mask_first            # x[l-1]
    h_next = pltpu.roll(h, lanes - 1, axis=1) * mask_last     # x[l+1]
    op = jnp.concatenate(
        [h_prev.astype(w_fused.dtype),
         h.astype(w_fused.dtype),
         h_next.astype(w_fused.dtype)], axis=0)               # (3*C_in, lanes)
    return jnp.dot(w_fused, op, preferred_element_type=jnp.float32) + bias


def resnet_block_kernel(x_ref,
                        A1_ref, At1_ref, A2_ref, At2_ref,
                        S_ref, St_ref, mfirst_ref, mlast_ref,
                        g1_ref, b1_ref, w1_ref, c1b_ref,
                        g2_ref, b2_ref, w2_ref, c2b_ref,
                        nw_ref, nb_ref,
                        o_ref, *, inv_n1, inv_n2):
    x = x_ref[...].astype(jnp.float32)
    S = S_ref[...]
    St = St_ref[...]
    mfirst = mfirst_ref[...]
    mlast = mlast_ref[...]

    # ---- norm1 + swish + conv1 ----
    h = _group_norm_seg(x, g1_ref[...], b1_ref[...],
                        A1_ref[...], At1_ref[...], S, St, inv_n1)
    h = _swish(h)
    h = _conv3_fused(h, w1_ref[...], c1b_ref[...], mfirst, mlast)

    # TODO(synk): temb_proj path omitted — Encoder3D builds ResnetBlock1D with
    # temb_channels=0 and always calls it with temb=None; dropout is identity
    # at inference.

    # ---- norm2 + swish + conv2 ----
    h = _group_norm_seg(h, g2_ref[...], b2_ref[...],
                        A2_ref[...], At2_ref[...], S, St, inv_n2)
    h = _swish(h)
    h = _conv3_fused(h, w2_ref[...], c2b_ref[...], mfirst, mlast)

    # ---- nin_shortcut (1x1 conv; in_channels != out_channels) + residual ----
    x_sc = jnp.dot(nw_ref[...], x.astype(nw_ref.dtype),
                   preferred_element_type=jnp.float32) + nb_ref[...]
    o_ref[...] = (x_sc + h).astype(o_ref.dtype)


def _round_up(a, m):
    return (a + m - 1) // m * m


@jax.jit
def resnet_block_1d(x, params):
    B, C_in, L = x.shape
    C_out = params["conv1_w"].shape[1]
    G = NUM_GROUPS
    bf16 = jnp.bfloat16
    f32 = jnp.float32

    # ---- lane-folding geometry: whole batch segments per block, block lane
    # width a multiple of 128 (lane-dense stores), target ~1024 lanes/block ----
    base = 128 // math.gcd(L, 128)            # min #segments for 128-aligned lanes
    target_lanes = 1024
    segs_per_block = base
    while (segs_per_block + base) * L <= target_lanes:
        segs_per_block += base
    segs_per_block = min(segs_per_block, _round_up(B, base))
    B_pad = _round_up(B, segs_per_block)
    num_blocks = B_pad // segs_per_block
    lanes_blk = segs_per_block * L
    lanes_pad = B_pad * L

    # ---- fold batch into lanes: (B, C, L) -> (C, B*L); pad fake segments ----
    x2d = jnp.transpose(x, (1, 0, 2)).reshape(C_in, B * L)
    if B_pad > B:
        x2d = jnp.pad(x2d, ((0, 0), (0, (B_pad - B) * L)))

    # ---- precomputed one-hots / masks (hoisted; DMA'd once, reused) ----
    lane = np.arange(lanes_blk)
    S = (lane[:, None] // L ==
         np.arange(segs_per_block)[None, :]).astype(np.float32)      # (lanes, nseg)
    St = np.ascontiguousarray(S.T)                                    # (nseg, lanes)
    mask_first = (lane % L != 0).astype(np.float32)[None, :]          # (1, lanes)
    mask_last = (lane % L != L - 1).astype(np.float32)[None, :]       # (1, lanes)

    def group_block_onehot(C):
        A = (np.arange(G)[:, None] ==
             (np.arange(C)[None, :] // (C // G))).astype(np.float32)  # (G, C)
        Ablk = np.kron(np.eye(2, dtype=np.float32), A)                # (2G, 2C)
        return Ablk, np.ascontiguousarray(Ablk.T)                     # (2C, 2G)

    A1blk, At1blk = group_block_onehot(C_in)
    A2blk, At2blk = group_block_onehot(C_out)

    # ---- fuse 3-tap conv weights -> (C_out, 3*C_in); bf16 matmul weights ----
    def fuse(w):                      # (3, C_out, C_in) -> (C_out, 3*C_in)
        return jnp.transpose(w, (1, 0, 2)).reshape(w.shape[1], 3 * w.shape[2])

    w1f = fuse(params["conv1_w"]).astype(bf16)
    w2f = fuse(params["conv2_w"]).astype(bf16)
    nw = params["nin_w"].astype(bf16)

    const_inputs = [jnp.asarray(A1blk), jnp.asarray(At1blk),
                    jnp.asarray(A2blk), jnp.asarray(At2blk),
                    jnp.asarray(S), jnp.asarray(St),
                    jnp.asarray(mask_first), jnp.asarray(mask_last)]
    param_inputs = [params["norm1_g"].astype(f32), params["norm1_b"].astype(f32),
                    w1f, params["conv1_b"].astype(f32),
                    params["norm2_g"].astype(f32), params["norm2_b"].astype(f32),
                    w2f, params["conv2_b"].astype(f32),
                    nw, params["nin_b"].astype(f32)]

    kernel = functools.partial(
        resnet_block_kernel,
        inv_n1=1.0 / float((C_in // G) * L),
        inv_n2=1.0 / float((C_out // G) * L))

    def whole_spec(p):                # constant block, revisited (no re-DMA)
        return pl.BlockSpec(p.shape, lambda t: (0, 0))

    out2d = pl.pallas_call(
        kernel,
        out_shape=jax.ShapeDtypeStruct((C_out, lanes_pad), x.dtype),
        grid_spec=pltpu.PrefetchScalarGridSpec(
            num_scalar_prefetch=0,
            grid=(num_blocks,),
            in_specs=[pl.BlockSpec((C_in, lanes_blk), lambda t: (0, t))]
                     + [whole_spec(p) for p in const_inputs]
                     + [whole_spec(p) for p in param_inputs],
            out_specs=pl.BlockSpec((C_out, lanes_blk), lambda t: (0, t)),
        ),
        compiler_params=pltpu.CompilerParams(
            dimension_semantics=("parallel",),
            vmem_limit_bytes=48 * 1024 * 1024),
    )(x2d, *const_inputs, *param_inputs)

    # ---- unfold lanes back to (B, C_out, L) ----
    out = out2d[:, :B * L].reshape(C_out, B, L)
    return jnp.transpose(out, (1, 0, 2))


# ---------------- pure-JAX reference (for correctness check) ----------------
def ref_forward(x, params, matmul_dtype=jnp.bfloat16):
    """Conv / nin matmul operands cast to bf16 (f32 accumulation) to mirror the
    kernel's MXU precision; GroupNorm / swish stay in f32."""
    f32 = jnp.float32

    def gn(h, g, b):
        B, C, L = h.shape
        G = NUM_GROUPS
        hg = h.reshape(B, G, (C // G) * L)
        m = hg.mean(axis=2, keepdims=True)
        v = hg.var(axis=2, keepdims=True)
        hn = ((hg - m) / jnp.sqrt(v + EPS)).reshape(B, C, L)
        return hn * g[None] + b[None]

    def conv3(h, w, bias):            # w: (3, C_out, C_in), bias: (C_out, 1)
        L = h.shape[2]
        hp = jnp.pad(h, ((0, 0), (0, 0), (1, 1))).astype(matmul_dtype)
        wq = w.astype(matmul_dtype)
        out = sum(jnp.einsum("oc,bcl->bol", wq[k], hp[:, :, k:k + L],
                             preferred_element_type=f32) for k in range(3))
        return out + bias[None]

    h = gn(x, params["norm1_g"], params["norm1_b"])
    h = h * jax.nn.sigmoid(h)
    h = conv3(h, params["conv1_w"], params["conv1_b"])
    h = gn(h, params["norm2_g"], params["norm2_b"])
    h = h * jax.nn.sigmoid(h)
    h = conv3(h, params["conv2_w"], params["conv2_b"])
    x_sc = jnp.einsum("oc,bcl->bol",
                      params["nin_w"].astype(matmul_dtype),
                      x.astype(matmul_dtype),
                      preferred_element_type=f32) + params["nin_b"][None]
    return x_sc + h


if __name__ == "__main__":
    B, C_in, C_out, L = 2, 32, 64, 16   # GroupNorm(32) requires C % 32 == 0

    key = jax.random.PRNGKey(0)
    ks = jax.random.split(key, 12)
    f32 = jnp.float32
    params = {
        "norm1_g": (1.0 + 0.1 * jax.random.normal(ks[0], (C_in, 1))).astype(f32),
        "norm1_b": (0.1 * jax.random.normal(ks[1], (C_in, 1))).astype(f32),
        # conv weights stored as (kernel_tap, C_out, C_in); PyTorch is (C_out, C_in, 3)
        "conv1_w": (0.05 * jax.random.normal(ks[2], (3, C_out, C_in))).astype(f32),
        "conv1_b": (0.05 * jax.random.normal(ks[3], (C_out, 1))).astype(f32),
        "norm2_g": (1.0 + 0.1 * jax.random.normal(ks[4], (C_out, 1))).astype(f32),
        "norm2_b": (0.1 * jax.random.normal(ks[5], (C_out, 1))).astype(f32),
        "conv2_w": (0.05 * jax.random.normal(ks[6], (3, C_out, C_out))).astype(f32),
        "conv2_b": (0.05 * jax.random.normal(ks[7], (C_out, 1))).astype(f32),
        "nin_w": (0.05 * jax.random.normal(ks[8], (C_out, C_in))).astype(f32),
        "nin_b": (0.05 * jax.random.normal(ks[9], (C_out, 1))).astype(f32),
    }
    x = jax.random.normal(ks[10], (B, C_in, L), dtype=f32)

    out = jax.block_until_ready(resnet_block_1d(x, params))
    assert out.shape == (B, C_out, L) and out.dtype == f32

    ref = ref_forward(x, params)
    max_err = float(jnp.max(jnp.abs(out - ref)))
    assert max_err < 1e-2, f"mismatch vs reference: {max_err}"

    print("KERNEL_OK")
</pallas_src>

<mosaic_0001>
module attributes {stable_mosaic.version = 11 : i64} {
  func.func @resnet_block_kernel(%arg0: i32, %arg1: memref<32x128xf32, #tpu.memory_space<vmem>>, %arg2: memref<64x64xf32, #tpu.memory_space<vmem>>, %arg3: memref<64x64xf32, #tpu.memory_space<vmem>>, %arg4: memref<64x128xf32, #tpu.memory_space<vmem>>, %arg5: memref<128x64xf32, #tpu.memory_space<vmem>>, %arg6: memref<128x8xf32, #tpu.memory_space<vmem>>, %arg7: memref<8x128xf32, #tpu.memory_space<vmem>>, %arg8: memref<1x128xf32, #tpu.memory_space<vmem>>, %arg9: memref<1x128xf32, #tpu.memory_space<vmem>>, %arg10: memref<32x1xf32, #tpu.memory_space<vmem>>, %arg11: memref<32x1xf32, #tpu.memory_space<vmem>>, %arg12: memref<64x96xbf16, #tpu.memory_space<vmem>>, %arg13: memref<64x1xf32, #tpu.memory_space<vmem>>, %arg14: memref<64x1xf32, #tpu.memory_space<vmem>>, %arg15: memref<64x1xf32, #tpu.memory_space<vmem>>, %arg16: memref<64x192xbf16, #tpu.memory_space<vmem>>, %arg17: memref<64x1xf32, #tpu.memory_space<vmem>>, %arg18: memref<64x32xbf16, #tpu.memory_space<vmem>>, %arg19: memref<64x1xf32, #tpu.memory_space<vmem>>, %arg20: memref<64x128xf32, #tpu.memory_space<vmem>>) attributes {dimension_semantics = [#tpu.dimension_semantics<parallel>], iteration_bounds = array<i64: 1>, scalar_prefetch = 0 : i64, scratch_operands = 0 : i64, tpu.core_type = #tpu.core_type<tc>, window_params = [{transform_indices = @transform_0, window_bounds = array<i64: 32, 128>}, {pipeline_mode = #tpu.pipeline_mode<synchronous>, transform_indices = @transform_1, window_bounds = array<i64: 64, 64>}, {pipeline_mode = #tpu.pipeline_mode<synchronous>, transform_indices = @transform_2, window_bounds = array<i64: 64, 64>}, {pipeline_mode = #tpu.pipeline_mode<synchronous>, transform_indices = @transform_3, window_bounds = array<i64: 64, 128>}, {pipeline_mode = #tpu.pipeline_mode<synchronous>, transform_indices = @transform_4, window_bounds = array<i64: 128, 64>}, {pipeline_mode = #tpu.pipeline_mode<synchronous>, transform_indices = @transform_5, window_bounds = array<i64: 128, 8>}, {pipeline_mode = #tpu.pipeline_mode<synchronous>, transform_indices = @transform_6, window_bounds = array<i64: 8, 128>}, {pipeline_mode = #tpu.pipeline_mode<synchronous>, transform_indices = @transform_7, window_bounds = array<i64: 1, 128>}, {pipeline_mode = #tpu.pipeline_mode<synchronous>, transform_indices = @transform_8, window_bounds = array<i64: 1, 128>}, {pipeline_mode = #tpu.pipeline_mode<synchronous>, transform_indices = @transform_9, window_bounds = array<i64: 32, 1>}, {pipeline_mode = #tpu.pipeline_mode<synchronous>, transform_indices = @transform_10, window_bounds = array<i64: 32, 1>}, {pipeline_mode = #tpu.pipeline_mode<synchronous>, transform_indices = @transform_11, window_bounds = array<i64: 64, 96>}, {pipeline_mode = #tpu.pipeline_mode<synchronous>, transform_indices = @transform_12, window_bounds = array<i64: 64, 1>}, {pipeline_mode = #tpu.pipeline_mode<synchronous>, transform_indices = @transform_13, window_bounds = array<i64: 64, 1>}, {pipeline_mode = #tpu.pipeline_mode<synchronous>, transform_indices = @transform_14, window_bounds = array<i64: 64, 1>}, {pipeline_mode = #tpu.pipeline_mode<synchronous>, transform_indices = @transform_15, window_bounds = array<i64: 64, 192>}, {pipeline_mode = #tpu.pipeline_mode<synchronous>, transform_indices = @transform_16, window_bounds = array<i64: 64, 1>}, {pipeline_mode = #tpu.pipeline_mode<synchronous>, transform_indices = @transform_17, window_bounds = array<i64: 64, 32>}, {pipeline_mode = #tpu.pipeline_mode<synchronous>, transform_indices = @transform_18, window_bounds = array<i64: 64, 1>}, {transform_indices = @transform_19, window_bounds = array<i64: 64, 128>}]} {
    %c0 = arith.constant 0 : index
    %c0_0 = arith.constant 0 : index
    %0 = vector.load %arg1[%c0, %c0_0] : memref<32x128xf32, #tpu.memory_space<vmem>>, vector<32x128xf32>
    %c0_1 = arith.constant 0 : index
    %c0_2 = arith.constant 0 : index
    %1 = vector.load %arg6[%c0_1, %c0_2] : memref<128x8xf32, #tpu.memory_space<vmem>>, vector<128x8xf32>
    %c0_3 = arith.constant 0 : index
    %c0_4 = arith.constant 0 : index
    %2 = vector.load %arg7[%c0_3, %c0_4] : memref<8x128xf32, #tpu.memory_space<vmem>>, vector<8x128xf32>
    %c0_5 = arith.constant 0 : index
    %c0_6 = arith.constant 0 : index
    %3 = vector.load %arg8[%c0_5, %c0_6] : memref<1x128xf32, #tpu.memory_space<vmem>>, vector<1x128xf32>
    %c0_7 = arith.constant 0 : index
    %c0_8 = arith.constant 0 : index
    %4 = vector.load %arg9[%c0_7, %c0_8] : memref<1x128xf32, #tpu.memory_space<vmem>>, vector<1x128xf32>
    %c0_9 = arith.constant 0 : index
    %c0_10 = arith.constant 0 : index
    %5 = vector.load %arg10[%c0_9, %c0_10] : memref<32x1xf32, #tpu.memory_space<vmem>>, vector<32x1xf32>
    %c0_11 = arith.constant 0 : index
    %c0_12 = arith.constant 0 : index
    %6 = vector.load %arg11[%c0_11, %c0_12] : memref<32x1xf32, #tpu.memory_space<vmem>>, vector<32x1xf32>
    %c0_13 = arith.constant 0 : index
    %c0_14 = arith.constant 0 : index
    %7 = vector.load %arg2[%c0_13, %c0_14] : memref<64x64xf32, #tpu.memory_space<vmem>>, vector<64x64xf32>
    %c0_15 = arith.constant 0 : index
    %c0_16 = arith.constant 0 : index
    %8 = vector.load %arg3[%c0_15, %c0_16] : memref<64x64xf32, #tpu.memory_space<vmem>>, vector<64x64xf32>
    %cst = arith.constant dense<0.000000e+00> : vector<32x8xf32>
    %9 = tpu.matmul %0, %1, %cst {dimension_numbers = #tpu.dot_dimension_numbers<[1], [0], [0], [1], [0, 0, 1, 1], [], []>} : vector<32x128xf32>, vector<128x8xf32>, vector<32x8xf32> -> vector<32x8xf32>
    %10 = arith.mulf %0, %0 : vector<32x128xf32>
    %cst_17 = arith.constant dense<0.000000e+00> : vector<32x8xf32>
    %11 = tpu.matmul %10, %1, %cst_17 {dimension_numbers = #tpu.dot_dimension_numbers<[1], [0], [0], [1], [0, 0, 1, 1], [], []>} : vector<32x128xf32>, vector<128x8xf32>, vector<32x8xf32> -> vector<32x8xf32>
    %12 = tpu.concatenate %9, %11 in 0 : vector<32x8xf32>, vector<32x8xf32> -> vector<64x8xf32>
    %cst_18 = arith.constant dense<0.000000e+00> : vector<64x8xf32>
    %13 = tpu.matmul %7, %12, %cst_18 {dimension_numbers = #tpu.dot_dimension_numbers<[1], [0], [0], [1], [0, 0, 1, 1], [], []>} : vector<64x64xf32>, vector<64x8xf32>, vector<64x8xf32> -> vector<64x8xf32>
    %cst_19 = arith.constant 6.250000e-02 : f32
    %14 = vector.broadcast %cst_19 : f32 to vector<64x8xf32>
    %15 = arith.mulf %13, %14 : vector<64x8xf32>
    %16 = vector.extract_strided_slice %15 {offsets = [0, 0], sizes = [32, 8], strides = [1, 1]} : vector<64x8xf32> to vector<32x8xf32>
    %17 = vector.extract_strided_slice %15 {offsets = [32, 0], sizes = [32, 8], strides = [1, 1]} : vector<64x8xf32> to vector<32x8xf32>
    %18 = arith.mulf %16, %16 : vector<32x8xf32>
    %19 = arith.subf %17, %18 : vector<32x8xf32>
    %cst_20 = arith.constant 0.000000e+00 : f32
    %20 = vector.broadcast %cst_20 : f32 to vector<32x8xf32>
    %21 = arith.maximumf %19, %20 : vector<32x8xf32>
    %cst_21 = arith.constant 9.99999997E-7 : f32
    %22 = vector.broadcast %cst_21 : f32 to vector<32x8xf32>
    %23 = arith.addf %21, %22 : vector<32x8xf32>
    %24 = math.rsqrt %23 : vector<32x8xf32>
    %25 = tpu.concatenate %16, %24 in 0 : vector<32x8xf32>, vector<32x8xf32> -> vector<64x8xf32>
    %cst_22 = arith.constant dense<0.000000e+00> : vector<64x8xf32>
    %26 = tpu.matmul %8, %25, %cst_22 {dimension_numbers = #tpu.dot_dimension_numbers<[1], [0], [0], [1], [0, 0, 1, 1], [], []>} : vector<64x64xf32>, vector<64x8xf32>, vector<64x8xf32> -> vector<64x8xf32>
    %27 = vector.extract_strided_slice %26 {offsets = [0, 0], sizes = [32, 8], strides = [1, 1]} : vector<64x8xf32> to vector<32x8xf32>
    %28 = vector.extract_strided_slice %26 {offsets = [32, 0], sizes = [32, 8], strides = [1, 1]} : vector<64x8xf32> to vector<32x8xf32>
    %29 = vector.broadcast %5 : vector<32x1xf32> to vector<32x8xf32>
    %30 = arith.mulf %28, %29 : vector<32x8xf32>
    %31 = arith.mulf %27, %30 : vector<32x8xf32>
    %32 = vector.broadcast %6 : vector<32x1xf32> to vector<32x8xf32>
    %33 = arith.subf %32, %31 : vector<32x8xf32>
    %34 = tpu.concatenate %30, %33 in 0 : vector<32x8xf32>, vector<32x8xf32> -> vector<64x8xf32>
    %cst_23 = arith.constant dense<0.000000e+00> : vector<64x128xf32>
    %35 = tpu.matmul %34, %2, %cst_23 {dimension_numbers = #tpu.dot_dimension_numbers<[1], [0], [0], [1], [0, 0, 1, 1], [], []>} : vector<64x8xf32>, vector<8x128xf32>, vector<64x128xf32> -> vector<64x128xf32>
    %36 = vector.extract_strided_slice %35 {offsets = [0, 0], sizes = [32, 128], strides = [1, 1]} : vector<64x128xf32> to vector<32x128xf32>
    %37 = arith.mulf %0, %36 : vector<32x128xf32>
    %38 = vector.extract_strided_slice %35 {offsets = [32, 0], sizes = [32, 128], strides = [1, 1]} : vector<64x128xf32> to vector<32x128xf32>
    %39 = arith.addf %37, %38 : vector<32x128xf32>
    %40 = arith.negf %39 : vector<32x128xf32>
    %41 = math.exp %40 : vector<32x128xf32>
    %cst_24 = arith.constant 1.000000e+00 : f32
    %42 = vector.broadcast %cst_24 : f32 to vector<32x128xf32>
    %43 = arith.addf %42, %41 : vector<32x128xf32>
    %44 = arith.divf %42, %43 : vector<32x128xf32>
    %45 = arith.mulf %39, %44 : vector<32x128xf32>
    %c0_25 = arith.constant 0 : index
    %c0_26 = arith.constant 0 : index
    %46 = vector.load %arg12[%c0_25, %c0_26] : memref<64x96xbf16, #tpu.memory_space<vmem>>, vector<64x96xbf16>
    %c0_27 = arith.constant 0 : index
    %c0_28 = arith.constant 0 : index
    %47 = vector.load %arg13[%c0_27, %c0_28] : memref<64x1xf32, #tpu.memory_space<vmem>>, vector<64x1xf32>
    %c1_i32 = arith.constant 1 : i32
    %48 = tpu.dynamic_rotate %45 by %c1_i32 dim 1 : vector<32x128xf32>, i32 -> vector<32x128xf32>
    %49 = vector.broadcast %3 : vector<1x128xf32> to vector<32x128xf32>
    %50 = arith.mulf %48, %49 : vector<32x128xf32>
    %c127_i32 = arith.constant 127 : i32
    %51 = tpu.dynamic_rotate %45 by %c127_i32 dim 1 : vector<32x128xf32>, i32 -> vector<32x128xf32>
    %52 = vector.broadcast %4 : vector<1x128xf32> to vector<32x128xf32>
    %53 = arith.mulf %51, %52 : vector<32x128xf32>
    %54 = arith.truncf %50 : vector<32x128xf32> to vector<32x128xbf16>
    %55 = arith.truncf %45 : vector<32x128xf32> to vector<32x128xbf16>
    %56 = arith.truncf %53 : vector<32x128xf32> to vector<32x128xbf16>
    %57 = tpu.concatenate %54, %55, %56 in 0 : vector<32x128xbf16>, vector<32x128xbf16>, vector<32x128xbf16> -> vector<96x128xbf16>
    %cst_29 = arith.constant dense<0.000000e+00> : vector<64x128xf32>
    %58 = tpu.matmul %46, %57, %cst_29 {dimension_numbers = #tpu.dot_dimension_numbers<[1], [0], [0], [1], [0, 0, 1, 1], [], []>} : vector<64x96xbf16>, vector<96x128xbf16>, vector<64x128xf32> -> vector<64x128xf32>
    %59 = vector.broadcast %47 : vector<64x1xf32> to vector<64x128xf32>
    %60 = arith.addf %58, %59 : vector<64x128xf32>
    %c0_30 = arith.constant 0 : index
    %c0_31 = arith.constant 0 : index
    %61 = vector.load %arg14[%c0_30, %c0_31] : memref<64x1xf32, #tpu.memory_space<vmem>>, vector<64x1xf32>
    %c0_32 = arith.constant 0 : index
    %c0_33 = arith.constant 0 : index
    %62 = vector.load %arg15[%c0_32, %c0_33] : memref<64x1xf32, #tpu.memory_space<vmem>>, vector<64x1xf32>
    %c0_34 = arith.constant 0 : index
    %c0_35 = arith.constant 0 : index
    %63 = vector.load %arg4[%c0_34, %c0_35] : memref<64x128xf32, #tpu.memory_space<vmem>>, vector<64x128xf32>
    %c0_36 = arith.constant 0 : index
    %c0_37 = arith.constant 0 : index
    %64 = vector.load %arg5[%c0_36, %c0_37] : memref<128x64xf32, #tpu.memory_space<vmem>>, vector<128x64xf32>
    %cst_38 = arith.constant dense<0.000000e+00> : vector<64x8xf32>
    %65 = tpu.matmul %60, %1, %cst_38 {dimension_numbers = #tpu.dot_dimension_numbers<[1], [0], [0], [1], [0, 0, 1, 1], [], []>} : vector<64x128xf32>, vector<128x8xf32>, vector<64x8xf32> -> vector<64x8xf32>
    %66 = arith.mulf %60, %60 : vector<64x128xf32>
    %cst_39 = arith.constant dense<0.000000e+00> : vector<64x8xf32>
    %67 = tpu.matmul %66, %1, %cst_39 {dimension_numbers = #tpu.dot_dimension_numbers<[1], [0], [0], [1], [0, 0, 1, 1], [], []>} : vector<64x128xf32>, vector<128x8xf32>, vector<64x8xf32> -> vector<64x8xf32>
    %68 = tpu.concatenate %65, %67 in 0 : vector<64x8xf32>, vector<64x8xf32> -> vector<128x8xf32>
    %cst_40 = arith.constant dense<0.000000e+00> : vector<64x8xf32>
    %69 = tpu.matmul %63, %68, %cst_40 {dimension_numbers = #tpu.dot_dimension_numbers<[1], [0], [0], [1], [0, 0, 1, 1], [], []>} : vector<64x128xf32>, vector<128x8xf32>, vector<64x8xf32> -> vector<64x8xf32>
    %cst_41 = arith.constant 3.125000e-02 : f32
    %70 = vector.broadcast %cst_41 : f32 to vector<64x8xf32>
    %71 = arith.mulf %69, %70 : vector<64x8xf32>
    %72 = vector.extract_strided_slice %71 {offsets = [0, 0], sizes = [32, 8], strides = [1, 1]} : vector<64x8xf32> to vector<32x8xf32>
    %73 = vector.extract_strided_slice %71 {offsets = [32, 0], sizes = [32, 8], strides = [1, 1]} : vector<64x8xf32> to vector<32x8xf32>
    %74 = arith.mulf %72, %72 : vector<32x8xf32>
    %75 = arith.subf %73, %74 : vector<32x8xf32>
    %cst_42 = arith.constant 0.000000e+00 : f32
    %76 = vector.broadcast %cst_42 : f32 to vector<32x8xf32>
    %77 = arith.maximumf %75, %76 : vector<32x8xf32>
    %cst_43 = arith.constant 9.99999997E-7 : f32
    %78 = vector.broadcast %cst_43 : f32 to vector<32x8xf32>
    %79 = arith.addf %77, %78 : vector<32x8xf32>
    %80 = math.rsqrt %79 : vector<32x8xf32>
    %81 = tpu.concatenate %72, %80 in 0 : vector<32x8xf32>, vector<32x8xf32> -> vector<64x8xf32>
    %cst_44 = arith.constant dense<0.000000e+00> : vector<128x8xf32>
    %82 = tpu.matmul %64, %81, %cst_44 {dimension_numbers = #tpu.dot_dimension_numbers<[1], [0], [0], [1], [0, 0, 1, 1], [], []>} : vector<128x64xf32>, vector<64x8xf32>, vector<128x8xf32> -> vector<128x8xf32>
    %83 = vector.extract_strided_slice %82 {offsets = [0, 0], sizes = [64, 8], strides = [1, 1]} : vector<128x8xf32> to vector<64x8xf32>
    %84 = vector.extract_strided_slice %82 {offsets = [64, 0], sizes = [64, 8], strides = [1, 1]} : vector<128x8xf32> to vector<64x8xf32>
    %85 = vector.broadcast %61 : vector<64x1xf32> to vector<64x8xf32>
    %86 = arith.mulf %84, %85 : vector<64x8xf32>
    %87 = arith.mulf %83, %86 : vector<64x8xf32>
    %88 = vector.broadcast %62 : vector<64x1xf32> to vector<64x8xf32>
    %89 = arith.subf %88, %87 : vector<64x8xf32>
    %90 = tpu.concatenate %86, %89 in 0 : vector<64x8xf32>, vector<64x8xf32> -> vector<128x8xf32>
    %cst_45 = arith.constant dense<0.000000e+00> : vector<128x128xf32>
    %91 = tpu.matmul %90, %2, %cst_45 {dimension_numbers = #tpu.dot_dimension_numbers<[1], [0], [0], [1], [0, 0, 1, 1], [], []>} : vector<128x8xf32>, vector<8x128xf32>, vector<128x128xf32> -> vector<128x128xf32>
    %92 = vector.extract_strided_slice %91 {offsets = [0, 0], sizes = [64, 128], strides = [1, 1]} : vector<128x128xf32> to vector<64x128xf32>
    %93 = arith.mulf %60, %92 : vector<64x128xf32>
    %94 = vector.extract_strided_slice %91 {offsets = [64, 0], sizes = [64, 128], strides = [1, 1]} : vector<128x128xf32> to vector<64x128xf32>
    %95 = arith.addf %93, %94 : vector<64x128xf32>
    %96 = arith.negf %95 : vector<64x128xf32>
    %97 = math.exp %96 : vector<64x128xf32>
    %cst_46 = arith.constant 1.000000e+00 : f32
    %98 = vector.broadcast %cst_46 : f32 to vector<64x128xf32>
    %99 = arith.addf %98, %97 : vector<64x128xf32>
    %100 = arith.divf %98, %99 : vector<64x128xf32>
    %101 = arith.mulf %95, %100 : vector<64x128xf32>
    %c0_47 = arith.constant 0 : index
    %c0_48 = arith.constant 0 : index
    %102 = vector.load %arg16[%c0_47, %c0_48] : memref<64x192xbf16, #tpu.memory_space<vmem>>, vector<64x192xbf16>
    %c0_49 = arith.constant 0 : index
    %c0_50 = arith.constant 0 : index
    %103 = vector.load %arg17[%c0_49, %c0_50] : memref<64x1xf32, #tpu.memory_space<vmem>>, vector<64x1xf32>
    %c1_i32_51 = arith.constant 1 : i32
    %104 = tpu.dynamic_rotate %101 by %c1_i32_51 dim 1 : vector<64x128xf32>, i32 -> vector<64x128xf32>
    %105 = vector.broadcast %3 : vector<1x128xf32> to vector<64x128xf32>
    %106 = arith.mulf %104, %105 : vector<64x128xf32>
    %c127_i32_52 = arith.constant 127 : i32
    %107 = tpu.dynamic_rotate %101 by %c127_i32_52 dim 1 : vector<64x128xf32>, i32 -> vector<64x128xf32>
    %108 = vector.broadcast %4 : vector<1x128xf32> to vector<64x128xf32>
    %109 = arith.mulf %107, %108 : vector<64x128xf32>
    %110 = arith.truncf %106 : vector<64x128xf32> to vector<64x128xbf16>
    %111 = arith.truncf %101 : vector<64x128xf32> to vector<64x128xbf16>
    %112 = arith.truncf %109 : vector<64x128xf32> to vector<64x128xbf16>
    %113 = tpu.concatenate %110, %111, %112 in 0 : vector<64x128xbf16>, vector<64x128xbf16>, vector<64x128xbf16> -> vector<192x128xbf16>
    %cst_53 = arith.constant dense<0.000000e+00> : vector<64x128xf32>
    %114 = tpu.matmul %102, %113, %cst_53 {dimension_numbers = #tpu.dot_dimension_numbers<[1], [0], [0], [1], [0, 0, 1, 1], [], []>} : vector<64x192xbf16>, vector<192x128xbf16>, vector<64x128xf32> -> vector<64x128xf32>
    %115 = vector.broadcast %103 : vector<64x1xf32> to vector<64x128xf32>
    %116 = arith.addf %114, %115 : vector<64x128xf32>
    %c0_54 = arith.constant 0 : index
    %c0_55 = arith.constant 0 : index
    %117 = vector.load %arg18[%c0_54, %c0_55] : memref<64x32xbf16, #tpu.memory_space<vmem>>, vector<64x32xbf16>
    %118 = arith.truncf %0 : vector<32x128xf32> to vector<32x128xbf16>
    %cst_56 = arith.constant dense<0.000000e+00> : vector<64x128xf32>
    %119 = tpu.matmul %117, %118, %cst_56 {dimension_numbers = #tpu.dot_dimension_numbers<[1], [0], [0], [1], [0, 0, 1, 1], [], []>} : vector<64x32xbf16>, vector<32x128xbf16>, vector<64x128xf32> -> vector<64x128xf32>
    %c0_57 = arith.constant 0 : index
    %c0_58 = arith.constant 0 : index
    %120 = vector.load %arg19[%c0_57, %c0_58] : memref<64x1xf32, #tpu.memory_space<vmem>>, vector<64x1xf32>
    %121 = vector.broadcast %120 : vector<64x1xf32> to vector<64x128xf32>
    %122 = arith.addf %119, %121 : vector<64x128xf32>
    %123 = arith.addf %122, %116 : vector<64x128xf32>
    %c0_59 = arith.constant 0 : index
    %c0_60 = arith.constant 0 : index
    %124 = vector.load %arg20[%c0_59, %c0_60] : memref<64x128xf32, #tpu.memory_space<vmem>>, vector<64x128xf32>
    tpu.vector_store %arg20[%c0_59, %c0_60], %123 {strides = array<i32>} : memref<64x128xf32, #tpu.memory_space<vmem>>, vector<64x128xf32>,
    return
  }
  func.func @transform_0(%arg0: i32) -> (i32, i32) {
    %c0_i32 = arith.constant 0 : i32
    %c0_i32_0 = arith.constant 0 : i32
    return %c0_i32, %arg0 : i32, i32
  }
  func.func @transform_1(%arg0: i32) -> (i32, i32) {
    %c0_i32 = arith.constant 0 : i32
    %c0_i32_0 = arith.constant 0 : i32
    %c0_i32_1 = arith.constant 0 : i32
    return %c0_i32, %c0_i32_0 : i32, i32
  }
  func.func @transform_2(%arg0: i32) -> (i32, i32) {
    %c0_i32 = arith.constant 0 : i32
    %c0_i32_0 = arith.constant 0 : i32
    %c0_i32_1 = arith.constant 0 : i32
    return %c0_i32, %c0_i32_0 : i32, i32
  }
  func.func @transform_3(%arg0: i32) -> (i32, i32) {
    %c0_i32 = arith.constant 0 : i32
    %c0_i32_0 = arith.constant 0 : i32
    %c0_i32_1 = arith.constant 0 : i32
    return %c0_i32, %c0_i32_0 : i32, i32
  }
  func.func @transform_4(%arg0: i32) -> (i32, i32) {
    %c0_i32 = arith.constant 0 : i32
    %c0_i32_0 = arith.constant 0 : i32
    %c0_i32_1 = arith.constant 0 : i32
    return %c0_i32, %c0_i32_0 : i32, i32
  }
  func.func @transform_5(%arg0: i32) -> (i32, i32) {
    %c0_i32 = arith.constant 0 : i32
    %c0_i32_0 = arith.constant 0 : i32
    %c0_i32_1 = arith.constant 0 : i32
    return %c0_i32, %c0_i32_0 : i32, i32
  }
  func.func @transform_6(%arg0: i32) -> (i32, i32) {
    %c0_i32 = arith.constant 0 : i32
    %c0_i32_0 = arith.constant 0 : i32
    %c0_i32_1 = arith.constant 0 : i32
    return %c0_i32, %c0_i32_0 : i32, i32
  }
  func.func @transform_7(%arg0: i32) -> (i32, i32) {
    %c0_i32 = arith.constant 0 : i32
    %c0_i32_0 = arith.constant 0 : i32
    %c0_i32_1 = arith.constant 0 : i32
    return %c0_i32, %c0_i32_0 : i32, i32
  }
  func.func @transform_8(%arg0: i32) -> (i32, i32) {
    %c0_i32 = arith.constant 0 : i32
    %c0_i32_0 = arith.constant 0 : i32
    %c0_i32_1 = arith.constant 0 : i32
    return %c0_i32, %c0_i32_0 : i32, i32
  }
  func.func @transform_9(%arg0: i32) -> (i32, i32) {
    %c0_i32 = arith.constant 0 : i32
    %c0_i32_0 = arith.constant 0 : i32
    %c0_i32_1 = arith.constant 0 : i32
    return %c0_i32, %c0_i32_0 : i32, i32
  }
  func.func @transform_10(%arg0: i32) -> (i32, i32) {
    %c0_i32 = arith.constant 0 : i32
    %c0_i32_0 = arith.constant 0 : i32
    %c0_i32_1 = arith.constant 0 : i32
    return %c0_i32, %c0_i32_0 : i32, i32
  }
  func.func @transform_11(%arg0: i32) -> (i32, i32) {
    %c0_i32 = arith.constant 0 : i32
    %c0_i32_0 = arith.constant 0 : i32
    %c0_i32_1 = arith.constant 0 : i32
    return %c0_i32, %c0_i32_0 : i32, i32
  }
  func.func @transform_12(%arg0: i32) -> (i32, i32) {
    %c0_i32 = arith.constant 0 : i32
    %c0_i32_0 = arith.constant 0 : i32
    %c0_i32_1 = arith.constant 0 : i32
    return %c0_i32, %c0_i32_0 : i32, i32
  }
  func.func @transform_13(%arg0: i32) -> (i32, i32) {
    %c0_i32 = arith.constant 0 : i32
    %c0_i32_0 = arith.constant 0 : i32
    %c0_i32_1 = arith.constant 0 : i32
    return %c0_i32, %c0_i32_0 : i32, i32
  }
  func.func @transform_14(%arg0: i32) -> (i32, i32) {
    %c0_i32 = arith.constant 0 : i32
    %c0_i32_0 = arith.constant 0 : i32
    %c0_i32_1 = arith.constant 0 : i32
    return %c0_i32, %c0_i32_0 : i32, i32
  }
  func.func @transform_15(%arg0: i32) -> (i32, i32) {
    %c0_i32 = arith.constant 0 : i32
    %c0_i32_0 = arith.constant 0 : i32
    %c0_i32_1 = arith.constant 0 : i32
    return %c0_i32, %c0_i32_0 : i32, i32
  }
  func.func @transform_16(%arg0: i32) -> (i32, i32) {
    %c0_i32 = arith.constant 0 : i32
    %c0_i32_0 = arith.constant 0 : i32
    %c0_i32_1 = arith.constant 0 : i32
    return %c0_i32, %c0_i32_0 : i32, i32
  }
  func.func @transform_17(%arg0: i32) -> (i32, i32) {
    %c0_i32 = arith.constant 0 : i32
    %c0_i32_0 = arith.constant 0 : i32
    %c0_i32_1 = arith.constant 0 : i32
    return %c0_i32, %c0_i32_0 : i32, i32
  }
  func.func @transform_18(%arg0: i32) -> (i32, i32) {
    %c0_i32 = arith.constant 0 : i32
    %c0_i32_0 = arith.constant 0 : i32
    %c0_i32_1 = arith.constant 0 : i32
    return %c0_i32, %c0_i32_0 : i32, i32
  }
  func.func @transform_19(%arg0: i32) -> (i32, i32) {
    %c0_i32 = arith.constant 0 : i32
    %c0_i32_0 = arith.constant 0 : i32
    return %c0_i32, %arg0 : i32, i32
  }
}

</mosaic_0001>

<bundles_post_ra>
// kernel: resnet_block_1d.1
= control target key start
LH: loop header
LB: loop body
LE: loop exit
PB: predicated region body
PF: predicated region fallthrough
CT: control target
= control target key end

     0   :  { %vm284_vm0 = vcmask 523264   ;;  %v3330_v53 = vmov 0   ;;  %vm623_vm1 = vcmask 64512   ;;  %s3332_s25 = smov 127   ;;  %vm907_vm2 = vcmask 785408   ;;  %s4208_s5 = inlined_call_operand.vmem [shape: f32[128,8], index: 5, kind: input, shape index: {}]   ;;  %s4209_s0 = inlined_call_operand.vmem [shape: f32[32,128], index: 0, kind: input, shape index: {}]   ;;  %s4210_s1 = inlined_call_operand.vmem [shape: f32[64,64], index: 1, kind: input, shape index: {}, may-alias: {1,2}]   ;;  %s4211_s2 = inlined_call_operand.vmem [shape: f32[64,64], index: 2, kind: input, shape index: {}, may-alias: {1,2}]   ;;  %s4212_s9 = inlined_call_operand.vmem [shape: f32[32,1], index: 9, kind: input, shape index: {}]   ;;  %s4213_s6 = inlined_call_operand.vmem [shape: f32[8,128], index: 6, kind: input, shape index: {}]   ;;  %s4214_s10 = inlined_call_operand.vmem [shape: f32[32,1], index: 10, kind: input, shape index: {}]   ;;  %s4215_s12 = inlined_call_operand.vmem [shape: f32[64,1], index: 12, kind: input, shape index: {}]   ;;  %s4216_s11 = inlined_call_operand.vmem [shape: bf16[64,96], index: 11, kind: input, shape index: {}]   ;;  %s4217_s13 = inlined_call_operand.vmem [shape: f32[64,1], index: 13, kind: input, shape index: {}]   ;;  %s4218_s14 = inlined_call_operand.vmem [shape: f32[64,1], index: 14, kind: input, shape index: {}]   ;;  %s4219_s7 = inlined_call_operand.vmem [shape: f32[1,128], index: 7, kind: input, shape index: {}]   ;;  %s4220_s8 = inlined_call_operand.vmem [shape: f32[1,128], index: 8, kind: input, shape index: {}]   ;;  %s4221_s3 = inlined_call_operand.vmem [shape: f32[64,128], index: 3, kind: input, shape index: {}]   ;;  %s4222_s4 = inlined_call_operand.vmem [shape: f32[128,64], index: 4, kind: input, shape index: {}]   ;;  %s4223_s17 = inlined_call_operand.vmem [shape: bf16[64,32], index: 17, kind: input, shape index: {}]   ;;  %s4224_s16 = inlined_call_operand.vmem [shape: f32[64,1], index: 16, kind: input, shape index: {}]   ;;  %s4225_s15 = inlined_call_operand.vmem [shape: bf16[64,192], index: 15, kind: input, shape index: {}]   ;;  %s4226_s18 = inlined_call_operand.vmem [shape: f32[64,1], index: 18, kind: input, shape index: {}]   ;;  %s4227_s19 = inlined_call_operand.vmem [shape: f32[64,128], index: 19, kind: output, shape index: {}]  }
   0x1   :  { %4232 = sst [smem:[#allocation2_spill]] %s4208_s5  ;;  %3238 = vset.pattern.permute.xlu0 %v3330_v53  ;;  %v86_v54 = vld [vmem:[%s4212_s9] sm:$0xff]  ;;  %3239 = vset.pattern.permute.xlu1 %v3330_v53  ;;  %v88_v55 = vld [vmem:[%s4212_s9 + $0x10] sm:$0xff]  ;;  %v87_v56 = vld [vmem:[%s4212_s9 + $0x8] sm:$0xff]  ;;  %vm2245_vm3 = vcmask 261120  }
   0x2   :  { %4233 = sst [smem:[#allocation3_spill]] %s4209_s0  ;;  %s4236_s20 = sld [smem:[#allocation2_spill]]  ;;  %573 = vperm.xlu0 %3238, %v86_v54   ;;  %583 = vperm.xlu1 %3239, %v88_v55   ;;  %v89_v57 = vld [vmem:[%s4212_s9 + $0x18] sm:$0xff]  ;;  %v3614_v58 = vld [vmem:[%s4213_s6] sm:$0xff]  ;;  %v91_v60 = vld [vmem:[%s4214_s10 + $0x8] sm:$0xff] }
   0x3   :  { %4234 = sst [smem:[#allocation4_spill]] %s4210_s1  ;;  %s4237_s5 = sld [smem:[#allocation3_spill]]  ;;  %v90_v59 = vld [vmem:[%s4214_s10] sm:$0xff]  ;;  %v92_v61 = vld [vmem:[%s4214_s10 + $0x10] sm:$0xff]  ;;  %v93_v62 = vld [vmem:[%s4214_s10 + $0x18] sm:$0xff] }
   0x4   :  { %4235 = sst [smem:[#allocation5_spill]] %s4211_s2  ;;  %s4238_s21 = sld [smem:[#allocation4_spill]] }
   0x5   :  { %s4239_s23 = sld [smem:[#allocation5_spill]] }
   0x6   :  { %578 = vperm.xlu0 %3238, %v87_v56   ;;  %588 = vperm.xlu1 %3239, %v89_v57  }
   0x8   :  { %v67_v0 = vld [vmem:[%s4236_s20] sm:$0xff]  ;;  %v68_v1 = vld [vmem:[%s4236_s20 + $0x8] sm:$0xff]  ;;  %v69_v2 = vld [vmem:[%s4236_s20 + $0x10] sm:$0xff] }
   0x9   :  { %v3442_v3 = vpack.c.bf16 %v68_v1, %v67_v0  ;;  %v70_v4 = vld [vmem:[%s4236_s20 + $0x18] sm:$0xff]  ;;  %v71_v6 = vld [vmem:[%s4236_s20 + $0x20] sm:$0xff]  ;;  %v72_v7 = vld [vmem:[%s4236_s20 + $0x28] sm:$0xff] }
   0xa   :  { %v3447_v5 = vpack.c.bf16 %v70_v4, %v69_v2  ;;  %v3460_v8 = vpack.c.bf16 %v72_v7, %v71_v6  ;;  %v3466_v9 = vld [vmem:[%s4237_s5] sm:$0xff]  ;;  %v73_v10 = vld [vmem:[%s4236_s20 + $0x30] sm:$0xff]  ;;  %v74_v11 = vld [vmem:[%s4236_s20 + $0x38] sm:$0xff]  ;;  %601 = vperm.xlu0 %3238, %v90_v59   ;;  %606 = vperm.xlu1 %3239, %v91_v60  }
   0xb   :  { %3028 = vmatprep.subr.bf16.mxu0 %v3442_v3  ;;  %3060 = vmatprep.subr.bf16.mxu1 %v3442_v3  ;;  %v195_v12 = vmul.f32 %v3466_v9, %v3466_v9  ;;  %v3480_v13 = vpack.c.bf16 %v74_v11, %v73_v10  ;;  %v75_v14 = vld [vmem:[%s4236_s20 + $0x40] sm:$0xff]  ;;  %v76_v15 = vld [vmem:[%s4236_s20 + $0x48] sm:$0xff]  ;;  %v77_v17 = vld [vmem:[%s4236_s20 + $0x50] sm:$0xff] }
   0xc   :  { %3030 = vmatpush3.bf16.msra.mxu0 %v3442_v3  ;;  %3062 = vmatpush3.bf16.msra.mxu1 %v3442_v3  ;;  %v3492_v16 = vpack.c.bf16 %v76_v15, %v75_v14  ;;  %v78_v18 = vld [vmem:[%s4236_s20 + $0x58] sm:$0xff]  ;;  %v79_v20 = vld [vmem:[%s4236_s20 + $0x60] sm:$0xff]  ;;  %v80_v21 = vld [vmem:[%s4236_s20 + $0x68] sm:$0xff] }
   0xd   :  { %3032 = vmatprep.subr.bf16.mxu0 %v3447_v5  ;;  %3064 = vmatprep.subr.bf16.mxu1 %v3447_v5  ;;  %v3504_v19 = vpack.c.bf16 %v78_v18, %v77_v17  ;;  %v3516_v22 = vpack.c.bf16 %v80_v21, %v79_v20  ;;  %v81_v23 = vld [vmem:[%s4236_s20 + $0x70] sm:$0xff]  ;;  %v82_v24 = vld [vmem:[%s4236_s20 + $0x78] sm:$0xff]  ;;  %v3538_v26 = vld [vmem:[%s4237_s5 + $0x8] sm:$0xff] }
   0xe   :  { %2683 = vmatprep.mubr.f32.mxu0 %v3466_v9  ;;  %2721 = vmatprep.mubr.f32.mxu1 %v195_v12  ;;  %v3528_v25 = vpack.c.bf16 %v82_v24, %v81_v23  ;;  %v3543_v27 = vld [vmem:[%s4237_s5 + $0x10] sm:$0xff]  ;;  %v196_v28 = vmul.f32 %v3538_v26, %v3538_v26  ;;  %v3554_v30 = vld [vmem:[%s4237_s5 + $0x18] sm:$0xff]  ;;  %v94_v32 = vld [vmem:[%s4238_s21] sm:$0xff] }
   0xf   :  { %v197_v29 = vmul.f32 %v3543_v27, %v3543_v27  ;;  %v198_v31 = vmul.f32 %v3554_v30, %v3554_v30  ;;  %v95_v45 = vld [vmem:[%s4238_s21 + $0x8] sm:$0xff]  ;;  %v96_v46 = vld [vmem:[%s4238_s21 + $0x10] sm:$0xff]  ;;  %v97_v47 = vld [vmem:[%s4238_s21 + $0x18] sm:$0xff]  ;;  %611 = vperm.xlu0 %3238, %v92_v61   ;;  %616 = vperm.xlu1 %3239, %v93_v62  }
  0x10   :  { %3034 = vmatpush3.bf16.msra.mxu0 %v3447_v5  ;;  %3066 = vmatpush3.bf16.msra.mxu1 %v3447_v5  ;;  %v98_v48 = vld [vmem:[%s4238_s21 + $0x20] sm:$0xff]  ;;  %v99_v49 = vld [vmem:[%s4238_s21 + $0x28] sm:$0xff]  ;;  %v100_v50 = vld [vmem:[%s4238_s21 + $0x30] sm:$0xff] }
  0x11   :  { %3036 = vmatprep.subr.bf16.mxu0 %v3460_v8  ;;  %3068 = vmatprep.subr.bf16.mxu1 %v3460_v8  ;;  %v101_v51 = vld [vmem:[%s4238_s21 + $0x38] sm:$0xff]  ;;  %v102_v52 = vld [vmem:[%s4239_s23] sm:$0xff]  ;;  %v107_v56 = vld [vmem:[%s4239_s23 + $0x28] sm:$0xff] }
  0x12   :  { %v105_v54 = vld [vmem:[%s4239_s23 + $0x18] sm:$0xff]  ;;  %v106_v55 = vld [vmem:[%s4239_s23 + $0x20] sm:$0xff]  ;;  %v108_v57 = vld [vmem:[%s4239_s23 + $0x30] sm:$0xff] }
  0x13   :  { %v109_v59 = vld [vmem:[%s4239_s23 + $0x38] sm:$0xff] }
  0x14   :  { %3038 = vmatpush3.bf16.msra.mxu0 %v3460_v8  ;;  %3070 = vmatpush3.bf16.msra.mxu1 %v3460_v8 }
  0x15   :  { %3040 = vmatprep.subr.bf16.mxu0 %v3480_v13  ;;  %3072 = vmatprep.subr.bf16.mxu1 %v3480_v13 }
  0x18   :  { %3042 = vmatpush3.bf16.msra.mxu0 %v3480_v13  ;;  %3074 = vmatpush3.bf16.msra.mxu1 %v3480_v13 }
  0x19   :  { %3044 = vmatprep.subr.bf16.mxu0 %v3492_v16  ;;  %3076 = vmatprep.subr.bf16.mxu1 %v3492_v16 }
  0x1c   :  { %3046 = vmatpush3.bf16.msra.mxu0 %v3492_v16  ;;  %3078 = vmatpush3.bf16.msra.mxu1 %v3492_v16 }
  0x1d   :  { %3048 = vmatprep.subr.bf16.mxu0 %v3504_v19  ;;  %3080 = vmatprep.subr.bf16.mxu1 %v3504_v19 }
  0x20   :  { %3050 = vmatpush3.bf16.msra.mxu0 %v3504_v19  ;;  %3082 = vmatpush3.bf16.msra.mxu1 %v3504_v19 }
  0x21   :  { %3052 = vmatprep.subr.bf16.mxu0 %v3516_v22  ;;  %3084 = vmatprep.subr.bf16.mxu1 %v3516_v22 }
  0x24   :  { %3054 = vmatpush3.bf16.msra.mxu0 %v3516_v22  ;;  %3086 = vmatpush3.bf16.msra.mxu1 %v3516_v22 }
  0x25   :  { %3056 = vmatprep.subr.bf16.mxu0 %v3528_v25  ;;  %3088 = vmatprep.subr.bf16.mxu1 %v3528_v25 }
  0x28   :  { %3058 = vmatpush3.bf16.msra.mxu0 %v3528_v25  ;;  %3090 = vmatpush3.bf16.msra.mxu1 %v3528_v25 }
  0x2b   :  { %2684 = vmatmul.mubr.f32.vlgmr.msra.gmra.mrb[0].mxu0 %v3538_v26  ;;  %2722 = vmatmul.mubr.f32.vlgmr.msra.gmra.mrb[0].mxu1 %v196_v28 }
  0x2c   :  { %2686 = vmatprep.mubr.f32.mxu0 %v3543_v27  ;;  %2724 = vmatprep.mubr.f32.mxu1 %v197_v29 }
  0x2f   :  { %2687 = vmatmul.mubr.f32.gmra.mrb[2].mxu0 %v3554_v30  ;;  %2725 = vmatmul.mubr.f32.gmra.mrb[2].mxu1 %v198_v31 }
  0x30   :  { %2743 = vmatprep.mubr.msk.f32.mxu0 %vm284_vm0, %v94_v32  ;;  %2771 = vmatprep.mubr.msk.f32.mxu1 %vm284_vm0, %v102_v52  ;;  %v104_v52 = vld [vmem:[%s4239_s23 + $0x10] sm:$0xff] }
  0x81   :  { %v574_v61 = vpop.permute.xlu0 %573 }
  0xfe   :  { %v2685_v33 = vpop.f32.mrb[0].mxu0  ;;  %v2723_v34 = vpop.f32.mrb[0].mxu1 }
  0xff   :  { %v176_v35 = vpop.f32.mrb[1].mxu0  ;;  %v265_v36 = vpop.f32.mrb[1].mxu1 }
 0x100   :  { %v3091_v37 = vpack.c.bf16 %v2685_v33, %v176_v35  ;;  %v3099_v38 = vpack.c.bf16 %v2723_v34, %v265_v36 }
 0x102   :  { %v2688_v39 = vpop.f32.mrb[2].mxu0  ;;  %3092 = vmatprep.subr.bf16.mxu0 %v3091_v37  ;;  %v2726_v40 = vpop.f32.mrb[2].mxu1 }
 0x103   :  { %v186_v41 = vpop.f32.mrb[3].mxu0  ;;  %3094 = vmatpush3.bf16.msra.mxu0 %v3091_v37  ;;  %v275_v42 = vpop.f32.mrb[3].mxu1 }
 0x104   :  { %v3095_v43 = vpack.c.bf16 %v2688_v39, %v186_v41  ;;  %v3103_v44 = vpack.c.bf16 %v2726_v40, %v275_v42 }
 0x106   :  { %3096 = vmatprep.subr.bf16.mxu0 %v3095_v43 }
 0x107   :  { %3098 = vmatpush3.bf16.msra.mxu0 %v3095_v43 }
 0x108   :  { %3100 = vmatprep.subr.bf16.mxu0 %v3099_v38 }
 0x10b   :  { %3102 = vmatpush3.bf16.msra.mxu0 %v3099_v38 }
 0x10c   :  { %3104 = vmatprep.subr.bf16.mxu0 %v3103_v44 }
 0x10f   :  { %3106 = vmatpush3.bf16.msra.mxu0 %v3103_v44 }
 0x110   :  { %2783 = vmatprep.subr.mxu0 %v3614_v58 }
 0x112   :  { %2744 = vmatmul.mubr.msk.f32.vlgmr.msra.gmra.mrb[4].mxu0 %vm284_vm0, %v95_v45 }
 0x113   :  { %2746 = vmatprep.mubr.msk.f32.mxu0 %vm284_vm0, %v96_v46  ;;  %2784 = vmatpush3.msra.mxu0 %v3614_v58 }
 0x114   :  { %3124 = vmatprep.subr.bf16.mxu0 %v3442_v3 }
 0x116   :  { %2747 = vmatmul.mubr.msk.f32.gmra.mrb[6].mxu0 %vm284_vm0, %v97_v47 }
 0x117   :  { %2749 = vmatprep.mubr.msk.f32.mxu0 %vm284_vm0, %v98_v48 }
 0x11a   :  { %2750 = vmatmul.mubr.msk.f32.gmra.mrb[8].mxu0 %vm284_vm0, %v99_v49 }
 0x11b   :  { %2752 = vmatprep.mubr.msk.f32.mxu0 %vm284_vm0, %v100_v50 }
 0x11e   :  { %2753 = vmatmul.mubr.msk.f32.gmra.mrb[10].mxu0 %vm284_vm0, %v101_v51  ;;  %v103_v51 = vld [vmem:[%s4239_s23 + $0x8] sm:$0xff]  ;;  %s3331_s23 = smov 1  }
 0x1e5   :  { %v2745_v63 = vpop.f32.mrb[4].mxu0 }
 0x1e6   :  { %v415_v0 = vmul.f32 0.0625, %v2745_v63  ;;  %v375_v1 = vpop.f32.mrb[5].mxu0  ;;  %v584_v63 = vpop.permute.xlu1 %583 }
 0x1e7   :  { %v414_v2 = vmul.f32 0.0625, %v375_v1 }
 0x1e8   :  { %v423_v15 = vmul.f32 %v415_v0, %v415_v0 }
 0x1e9   :  { %v3107_v4 = vpack.c.bf16 %v415_v0, %v414_v2  ;;  %v2748_v6 = vpop.f32.mrb[6].mxu0  ;;  %v422_v20 = vmul.f32 %v414_v2, %v414_v2  ;;  %v579_v2 = vpop.permute.xlu0 %578 }
 0x1ea   :  { %v417_v7 = vmul.f32 0.0625, %v2748_v6  ;;  %v385_v10 = vpop.f32.mrb[7].mxu0 }
 0x1eb   :  { %v416_v11 = vmul.f32 0.0625, %v385_v10  ;;  %3108 = vmatprep.subr.bf16.mxu1 %v3107_v4  ;;  %v589_v10 = vpop.permute.xlu1 %588 }
 0x1ec   :  { %3110 = vmatpush3.bf16.msra.mxu1 %v3107_v4  ;;  %v425_v29 = vmul.f32 %v417_v7, %v417_v7 }
 0x1ed   :  { %v3111_v12 = vpack.c.bf16 %v417_v7, %v416_v11  ;;  %v2751_v14 = vpop.f32.mrb[8].mxu0  ;;  %v424_v34 = vmul.f32 %v416_v11, %v416_v11 }
 0x1ee   :  { %v419_v17 = vmul.f32 0.0625, %v2751_v14  ;;  %v395_v18 = vpop.f32.mrb[9].mxu0 }
 0x1ef   :  { %v418_v21 = vmul.f32 0.0625, %v395_v18  ;;  %3112 = vmatprep.subr.bf16.mxu1 %v3111_v12 }
 0x1f0   :  { %v427_v23 = vsub.f32 %v419_v17, %v423_v15  ;;  %3114 = vmatpush3.bf16.msra.mxu1 %v3111_v12  ;;  %v602_v17 = vpop.permute.xlu0 %601 }
 0x1f1   :  { %v426_v24 = vsub.f32 %v418_v21, %v422_v20  ;;  %v2754_v28 = vpop.f32.mrb[10].mxu0 }
 0x1f2   :  { %v431_v31 = vmax.f32 %v427_v23, 0.0  ;;  %v421_v32 = vmul.f32 0.0625, %v2754_v28  ;;  %v405_v33 = vpop.f32.mrb[11].mxu0 }
 0x1f3   :  { %v430_v35 = vmax.f32 %v426_v24, 0.0  ;;  %v420_v36 = vmul.f32 0.0625, %v405_v33  ;;  %v607_v24 = vpop.permute.xlu1 %606 }
 0x1f4   :  { %v435_v37 = vadd.f32 1e-06, %v431_v31  ;;  %v429_v38 = vsub.f32 %v421_v32, %v425_v29  ;;  %v612_v31 = vpop.permute.xlu0 %611 }
 0x1f5   :  { %v434_v39 = vadd.f32 1e-06, %v430_v35  ;;  %v428_v40 = vsub.f32 %v420_v36, %v424_v34 }
 0x1f6   :  { %3260 = vrsqrt.f32 %v435_v37  ;;  %v433_v41 = vmax.f32 %v429_v38, 0.0 }
 0x1f7   :  { %3262 = vrsqrt.f32 %v434_v39  ;;  %v432_v42 = vmax.f32 %v428_v40, 0.0  ;;  %v617_v34 = vpop.permute.xlu1 %616 }
 0x1f8   :  { %v437_v43 = vadd.f32 1e-06, %v433_v41 }
 0x1f9   :  { %v436_v44 = vadd.f32 1e-06, %v432_v42 }
 0x1fa   :  { %3264 = vrsqrt.f32 %v437_v43 }
 0x1fb   :  { %3266 = vrsqrt.f32 %v436_v44 }
 0x200   :  { %v3261_v45 = vpop.eup %3260 }
 0x201   :  { %v3263_v46 = vpop.eup %3262 }
 0x202   :  { %v3115_v47 = vpack.c.bf16 %v3261_v45, %v3263_v46 }
 0x204   :  { %v3265_v48 = vpop.eup %3264  ;;  %3116 = vmatprep.subr.bf16.mxu1 %v3115_v47 }
 0x205   :  { %v3267_v49 = vpop.eup %3266  ;;  %3118 = vmatpush3.bf16.msra.mxu1 %v3115_v47 }
 0x206   :  { %v3119_v50 = vpack.c.bf16 %v3265_v48, %v3267_v49 }
 0x208   :  { %3120 = vmatprep.subr.bf16.mxu1 %v3119_v50 }
 0x209   :  { %3122 = vmatpush3.bf16.msra.mxu1 %v3119_v50 }
 0x20c   :  { %2772 = vmatmul.mubr.msk.f32.vlgmr.msra.gmra.mrb[4].mxu1 %vm284_vm0, %v103_v51 }
 0x20d   :  { %2774 = vmatprep.mubr.msk.f32.mxu1 %vm284_vm0, %v104_v52 }
 0x210   :  { %2775 = vmatmul.mubr.msk.f32.gmra.mrb[6].mxu1 %vm284_vm0, %v105_v54 }
 0x211   :  { %2777 = vmatprep.mubr.msk.f32.mxu1 %vm284_vm0, %v106_v55 }
 0x214   :  { %2778 = vmatmul.mubr.msk.f32.gmra.mrb[8].mxu1 %vm284_vm0, %v107_v56 }
 0x215   :  { %2780 = vmatprep.mubr.msk.f32.mxu1 %vm284_vm0, %v108_v57 }
 0x218   :  { %2781 = vmatmul.mubr.msk.f32.gmra.mrb[10].mxu1 %vm284_vm0, %v109_v59 }
 0x2df   :  { %v2773_v60 = vpop.f32.mrb[4].mxu1 }
 0x2e0   :  { %v532_v62 = vpop.f32.mrb[5].mxu1 }
 0x2e3   :  { %v2776_v0 = vpop.f32.mrb[6].mxu1 }
 0x2e4   :  { %v542_v1 = vpop.f32.mrb[7].mxu1 }
 0x2e7   :  { %v2779_v4 = vpop.f32.mrb[8].mxu1 }
 0x2e8   :  { %v592_v6 = vmul.f32 %v2779_v4, %v579_v2  ;;  %v552_v7 = vpop.f32.mrb[9].mxu1 }
 0x2e9   :  { %v591_v11 = vmul.f32 %v574_v61, %v552_v7 }
 0x2ea   :  { %v596_v12 = vmul.f32 %v2773_v60, %v592_v6 }
 0x2eb   :  { %v595_v14 = vmul.f32 %v591_v11, %v532_v62  ;;  %v2782_v15 = vpop.f32.mrb[10].mxu1  ;;  %2785 = vmatprep.mubr.msk.f32.mxu0 %vm623_vm1, %v591_v11 }
 0x2ec   :  { %v594_v18 = vmul.f32 %v2782_v15, %v589_v10  ;;  %v562_v20 = vpop.f32.mrb[11].mxu1  ;;  %2786 = vmatmul.mubr.msk.f32.vlgmr.msra.gmra.mrb[12].mxu0 %vm623_vm1, %v592_v6  ;;  %v620_v32 = vsub.f32 %v607_v24, %v596_v12  ;;  %v798_v12 = vld [vmem:[%s4215_s12 + $0x8] sm:$0xff]  ;;  %v797_v15 = vld [vmem:[%s4215_s12] sm:$0xff]  ;;  %v803_v24 = vld [vmem:[%s4215_s12 + $0x30] sm:$0xff] }
 0x2ed   :  { %v593_v21 = vmul.f32 %v584_v63, %v562_v20  ;;  %3126 = vmatpush3.bf16.msra.mxu0 %v3442_v3  ;;  %v619_v28 = vsub.f32 %v602_v17, %v595_v14  ;;  %v3240_v14 = vld [vmem:[%s4216_s11] sm:$0xff]   ;;  %v800_v17 = vld [vmem:[%s4215_s12 + $0x18] sm:$0xff]  ;;  %v802_v20 = vld [vmem:[%s4215_s12 + $0x28] sm:$0xff] }
 0x2ee   :  { %v598_v23 = vmul.f32 %v2776_v0, %v594_v18  ;;  %3128 = vmatprep.subr.bf16.mxu0 %v3447_v5  ;;  %2809 = vmatprep.mubr.msk.bf16.mxu1 %vm907_vm2, %v3240_v14 }
 0x2ef   :  { %v597_v29 = vmul.f32 %v593_v21, %v542_v1  ;;  %2788 = vmatprep.mubr.msk.f32.mxu0 %vm623_vm1, %v593_v21  ;;  %v801_v21 = vld [vmem:[%s4215_s12 + $0x20] sm:$0xff] }
 0x2f0   :  { %2789 = vmatmul.mubr.msk.f32.gmra.mrb[14].mxu0 %vm623_vm1, %v594_v18  ;;  %v622_v35 = vsub.f32 %v617_v34, %v598_v23  ;;  %v799_v18 = vld [vmem:[%s4215_s12 + $0x10] sm:$0xff]  ;;  %v804_v23 = vld [vmem:[%s4215_s12 + $0x38] sm:$0xff]  ;;  %v989_v34 = vld [vmem:[%s4217_s13 + $0x20] sm:$0xff] }
 0x2f1   :  { %2791 = vmatprep.mubr.msk.f32.mxu0 %vm623_vm1, %v619_v28  ;;  %3130 = vmatpush3.bf16.msra.mxu0 %v3447_v5  ;;  %v621_v33 = vsub.f32 %v612_v31, %v597_v29  ;;  %v986_v28 = vld [vmem:[%s4217_s13 + $0x8] sm:$0xff]  ;;  %v985_v29 = vld [vmem:[%s4217_s13] sm:$0xff]  ;;  %v988_v31 = vld [vmem:[%s4217_s13 + $0x18] sm:$0xff] }
 0x2f2   :  { %3132 = vmatprep.subr.bf16.mxu0 %v3460_v8 }
 0x2f4   :  { %2792 = vmatmul.mubr.msk.f32.gmra.mrb[16].mxu0 %vm623_vm1, %v620_v32  ;;  %v987_v32 = vld [vmem:[%s4217_s13 + $0x10] sm:$0xff] }
 0x2f5   :  { %2794 = vmatprep.mubr.msk.f32.mxu0 %vm623_vm1, %v621_v33  ;;  %3134 = vmatpush3.bf16.msra.mxu0 %v3460_v8  ;;  %v990_v33 = vld [vmem:[%s4217_s13 + $0x28] sm:$0xff] }
 0x2f6   :  { %3136 = vmatprep.subr.bf16.mxu0 %v3480_v13 }
 0x2f8   :  { %2795 = vmatmul.mubr.msk.f32.gmra.mrb[18].mxu0 %vm623_vm1, %v622_v35  ;;  %v992_v35 = vld [vmem:[%s4217_s13 + $0x38] sm:$0xff] }
 0x2f9   :  { %3138 = vmatpush3.bf16.msra.mxu0 %v3480_v13 }
 0x2fa   :  { %3140 = vmatprep.subr.bf16.mxu0 %v3492_v16 }
 0x2fd   :  { %3142 = vmatpush3.bf16.msra.mxu0 %v3492_v16 }
 0x2fe   :  { %3144 = vmatprep.subr.bf16.mxu0 %v3504_v19 }
 0x301   :  { %3146 = vmatpush3.bf16.msra.mxu0 %v3504_v19 }
 0x302   :  { %3148 = vmatprep.subr.bf16.mxu0 %v3516_v22 }
 0x305   :  { %3150 = vmatpush3.bf16.msra.mxu0 %v3516_v22 }
 0x306   :  { %3152 = vmatprep.subr.bf16.mxu0 %v3528_v25 }
 0x309   :  { %3154 = vmatpush3.bf16.msra.mxu0 %v3528_v25 }
 0x3bf   :  { %v2787_v36 = vpop.f32.mrb[12].mxu0 }
 0x3c0   :  { %v714_v37 = vpop.f32.mrb[13].mxu0  ;;  %v754_v40 = vmul.f32 %v2787_v36, %v3538_v26  ;;  %v991_v36 = vld [vmem:[%s4217_s13 + $0x30] sm:$0xff] }
 0x3c1   :  { %v753_v41 = vmul.f32 %v714_v37, %v3466_v9  ;;  %v994_v37 = vld [vmem:[%s4218_s14 + $0x8] sm:$0xff] }
 0x3c3   :  { %v2790_v38 = vpop.f32.mrb[14].mxu0 }
 0x3c4   :  { %v724_v39 = vpop.f32.mrb[15].mxu0  ;;  %v756_v46 = vmul.f32 %v2790_v38, %v3554_v30  ;;  %v993_v38 = vld [vmem:[%s4218_s14] sm:$0xff] }
 0x3c5   :  { %v755_v48 = vmul.f32 %v724_v39, %v3543_v27  ;;  %v996_v39 = vld [vmem:[%s4218_s14 + $0x18] sm:$0xff] }
 0x3c7   :  { %v2793_v42 = vpop.f32.mrb[16].mxu0 }
 0x3c8   :  { %v758_v43 = vadd.f32 %v2793_v42, %v754_v40  ;;  %v734_v44 = vpop.f32.mrb[17].mxu0  ;;  %v995_v40 = vld [vmem:[%s4218_s14 + $0x10] sm:$0xff]  ;;  %v997_v42 = vld [vmem:[%s4218_s14 + $0x20] sm:$0xff] }
 0x3c9   :  { %v757_v45 = vadd.f32 %v753_v41, %v734_v44  ;;  %v998_v41 = vld [vmem:[%s4218_s14 + $0x28] sm:$0xff]  ;;  %v999_v44 = vld [vmem:[%s4218_s14 + $0x30] sm:$0xff] }
 0x3ca   :  { %v2368_v47 = vmul.f32 -1.442695, %v758_v43 }
 0x3cb   :  { %v2367_v49 = vmul.f32 -1.442695, %v757_v45  ;;  %v2796_v50 = vpop.f32.mrb[18].mxu0 }
 0x3cc   :  { %3268 = vpow2.f32 %v2368_v47  ;;  %v760_v51 = vadd.f32 %v2796_v50, %v756_v46  ;;  %v744_v52 = vpop.f32.mrb[19].mxu0 }
 0x3cd   :  { %3270 = vpow2.f32 %v2367_v49  ;;  %v759_v54 = vadd.f32 %v755_v48, %v744_v52 }
 0x3ce   :  { %v2370_v55 = vmul.f32 -1.442695, %v760_v51 }
 0x3cf   :  { %v2369_v26 = vmul.f32 -1.442695, %v759_v54 }
 0x3d0   :  { %3272 = vpow2.f32 %v2370_v55 }
 0x3d1   :  { %3274 = vpow2.f32 %v2369_v26 }
 0x3d6   :  { %v3269_v9 = vpop.eup %3268 }
 0x3d7   :  { %v3271_v56 = vpop.eup %3270  ;;  %v774_v57 = vadd.f32 1.0, %v3269_v9 }
 0x3d8   :  { %v773_v59 = vadd.f32 1.0, %v3271_v56 }
 0x3d9   :  { %3276 = vrcp.f32 %v774_v57  ;;  %v2372_v57 = vld [vmem:[%s4220_s8] ss:$0 sm:$0xff] }
 0x3da   :  { %v3273_v30 = vpop.eup %3272  ;;  %3278 = vrcp.f32 %v773_v59 }
 0x3db   :  { %v3275_v60 = vpop.eup %3274  ;;  %v776_v27 = vadd.f32 1.0, %v3273_v30 }
 0x3dc   :  { %v775_v61 = vadd.f32 1.0, %v3275_v60 }
 0x3dd   :  { %3280 = vrcp.f32 %v776_v27 }
 0x3de   :  { %3282 = vrcp.f32 %v775_v61 }
 0x3e3   :  { %v3277_v62 = vpop.eup %3276 }
 0x3e4   :  { %v3279_v63 = vpop.eup %3278  ;;  %v786_v0 = vmul.f32 %v3277_v62, %v758_v43  ;;  %v1000_v43 = vld [vmem:[%s4218_s14 + $0x38] sm:$0xff] }
 0x3e5   :  { %v785_v1 = vmul.f32 %v3279_v63, %v757_v45  ;;  %v3777_v45 = vld [vmem:[%s4219_s7] ss:$0 sm:$0xff] }
 0x3e6   :  { %807 = vrot.lane.b32.xlu1 %v786_v0, %s3331_s23 }
 0x3e7   :  { %v3281_v2 = vpop.eup %3280  ;;  %805 = vrot.lane.b32.xlu0 %v785_v1, %s3331_s23  ;;  %v3688_v4 = vpack.c.bf16 %v786_v0, %v785_v1 }
 0x3e8   :  { %v3283_v6 = vpop.eup %3282  ;;  %v788_v7 = vmul.f32 %v3281_v2, %v760_v51  ;;  %v3242_v2 = vld [vmem:[%s4216_s11 + $0x10] sm:$0xff]  }
 0x3e9   :  { %v787_v10 = vmul.f32 %v3283_v6, %v759_v54 }
 0x3ea   :  { %811 = vrot.lane.b32.xlu1 %v788_v7, %s3331_s23 }
 0x3eb   :  { %809 = vrot.lane.b32.xlu0 %v787_v10, %s3331_s23  ;;  %v3692_v11 = vpack.c.bf16 %v788_v7, %v787_v10 }
 0x3ee   :  { %825 = vrot.lane.b32.xlu1 %v786_v0, %s3332_s25 }
 0x3ef   :  { %823 = vrot.lane.b32.xlu0 %v785_v1, %s3332_s25  ;;  %v3241_v1 = vld [vmem:[%s4216_s11 + $0x8] sm:$0xff]  }
 0x3f2   :  { %829 = vrot.lane.b32.xlu1 %v788_v7, %s3332_s25 }
 0x3f3   :  { %827 = vrot.lane.b32.xlu0 %v787_v10, %s3332_s25 }
 0x3f6   :  { %854 = vperm.xlu1 %3239, %v798_v12  }
 0x3f7   :  { %849 = vperm.xlu0 %3238, %v797_v15  }
 0x3fa   :  { %864 = vperm.xlu1 %3239, %v800_v17  }
 0x3fb   :  { %859 = vperm.xlu0 %3238, %v799_v18  }
 0x3fe   :  { %874 = vperm.xlu1 %3239, %v802_v20  }
 0x3ff   :  { %869 = vperm.xlu0 %3238, %v801_v21  }
 0x402   :  { %884 = vperm.xlu1 %3239, %v804_v23  }
 0x403   :  { %879 = vperm.xlu0 %3238, %v803_v24  }
 0x406   :  { %1576 = vperm.xlu1 %3239, %v986_v28  }
 0x407   :  { %1571 = vperm.xlu0 %3238, %v985_v29  }
 0x40a   :  { %1586 = vperm.xlu1 %3239, %v988_v31  }
 0x40b   :  { %1581 = vperm.xlu0 %3238, %v987_v32  }
 0x40e   :  { %1596 = vperm.xlu1 %3239, %v990_v33  }
 0x40f   :  { %1591 = vperm.xlu0 %3238, %v989_v34  }
 0x412   :  { %1606 = vperm.xlu1 %3239, %v992_v35  }
 0x413   :  { %1601 = vperm.xlu0 %3238, %v991_v36  }
 0x416   :  { %1632 = vperm.xlu1 %3239, %v994_v37  }
 0x417   :  { %1627 = vperm.xlu0 %3238, %v993_v38  }
 0x41a   :  { %1642 = vperm.xlu1 %3239, %v996_v39  }
 0x41b   :  { %1637 = vperm.xlu0 %3238, %v995_v40   ;;  %v1001_v40 = vld [vmem:[%s4221_s3] sm:$0xff] }
 0x41e   :  { %1652 = vperm.xlu1 %3239, %v998_v41  }
 0x41f   :  { %1647 = vperm.xlu0 %3238, %v997_v42  }
 0x422   :  { %1662 = vperm.xlu1 %3239, %v1000_v43  }
 0x423   :  { %1657 = vperm.xlu0 %3238, %v999_v44  }
 0x458   :  { %v808_v46 = vpop.permute.xlu1 %807 }
 0x459   :  { %v820_v47 = vmul.f32 %v3777_v45, %v808_v46  ;;  %v806_v48 = vpop.permute.xlu0 %805 }
 0x45a   :  { %v819_v49 = vmul.f32 %v3777_v45, %v806_v48 }
 0x45c   :  { %v841_v50 = vpack.c.bf16 %v820_v47, %v819_v49  ;;  %v812_v51 = vpop.permute.xlu1 %811 }
 0x45d   :  { %v822_v52 = vmul.f32 %v3777_v45, %v812_v51  ;;  %v810_v54 = vpop.permute.xlu0 %809 }
 0x45e   :  { %v821_v55 = vmul.f32 %v3777_v45, %v810_v54  ;;  %2797 = vmatprep.subr.bf16.mxu1 %v841_v50 }
 0x45f   :  { %2798 = vmatpush3.bf16.msra.mxu1 %v841_v50 }
 0x460   :  { %v842_v26 = vpack.c.bf16 %v822_v52, %v821_v55  ;;  %v826_v9 = vpop.permute.xlu1 %825 }
 0x461   :  { %v824_v56 = vpop.permute.xlu0 %823  ;;  %v838_v59 = vmul.f32 %v2372_v57, %v826_v9 }
 0x462   :  { %2799 = vmatprep.subr.bf16.mxu1 %v842_v26  ;;  %v837_v30 = vmul.f32 %v2372_v57, %v824_v56 }
 0x463   :  { %2800 = vmatpush3.bf16.msra.mxu1 %v842_v26 }
 0x464   :  { %2801 = vmatprep.subr.bf16.mxu1 %v3688_v4  ;;  %v830_v60 = vpop.permute.xlu1 %829  ;;  %v845_v61 = vpack.c.bf16 %v838_v59, %v837_v30 }
 0x465   :  { %v828_v27 = vpop.permute.xlu0 %827  ;;  %v840_v62 = vmul.f32 %v2372_v57, %v830_v60 }
 0x466   :  { %v839_v63 = vmul.f32 %v2372_v57, %v828_v27 }
 0x467   :  { %2802 = vmatpush3.bf16.msra.mxu1 %v3688_v4  ;;  %v3243_v4 = vld [vmem:[%s4216_s11 + $0x18] sm:$0xff]  }
 0x468   :  { %2803 = vmatprep.subr.bf16.mxu1 %v3692_v11  ;;  %v846_v0 = vpack.c.bf16 %v840_v62, %v839_v63 }
 0x46b   :  { %2804 = vmatpush3.bf16.msra.mxu1 %v3692_v11 }
 0x46c   :  { %2805 = vmatprep.subr.bf16.mxu1 %v845_v61 }
 0x46f   :  { %2806 = vmatpush3.bf16.msra.mxu1 %v845_v61 }
 0x470   :  { %2807 = vmatprep.subr.bf16.mxu1 %v846_v0 }
 0x473   :  { %2808 = vmatpush3.bf16.msra.mxu1 %v846_v0  ;;  %v1002_v0 = vld [vmem:[%s4221_s3 + $0x8] sm:$0xff] }
 0x474   :  { %3156 = vmatprep.subr.bf16.mxu1 %v3442_v3 }
 0x476   :  { %2810 = vmatmul.mubr.msk.bf16.vlgmr.msra.gmra.mrb[12].mxu1 %vm907_vm2, %v3241_v1  ;;  %v1003_v1 = vld [vmem:[%s4221_s3 + $0x10] sm:$0xff] }
 0x477   :  { %2813 = vmatprep.mubr.msk.bf16.mxu1 %vm907_vm2, %v3242_v2  ;;  %3158 = vmatpush3.bf16.msra.mxu1 %v3442_v3  ;;  %v850_v3 = vpop.permute.xlu0 %849  ;;  %v1004_v2 = vld [vmem:[%s4221_s3 + $0x18] sm:$0xff] }
 0x478   :  { %3160 = vmatprep.subr.bf16.mxu1 %v3447_v5 }
 0x47b   :  { %3162 = vmatpush3.bf16.msra.mxu1 %v3447_v5  ;;  %v855_v5 = vpop.permute.xlu1 %854 }
 0x47c   :  { %3164 = vmatprep.subr.bf16.mxu1 %v3460_v8 }
 0x47e   :  { %2814 = vmatmul.mubr.msk.bf16.gmra.mrb[16].mxu1 %vm907_vm2, %v3243_v4  ;;  %v1005_v4 = vld [vmem:[%s4221_s3 + $0x20] sm:$0xff] }
 0x47f   :  { %3166 = vmatpush3.bf16.msra.mxu1 %v3460_v8  ;;  %v860_v8 = vpop.permute.xlu0 %859  ;;  %v865_v6 = vpop.permute.xlu1 %864 }
 0x480   :  { %3168 = vmatprep.subr.bf16.mxu1 %v3480_v13 }
 0x483   :  { %3170 = vmatpush3.bf16.msra.mxu1 %v3480_v13  ;;  %v870_v12 = vpop.permute.xlu0 %869  ;;  %v875_v17 = vpop.permute.xlu1 %874 }
 0x484   :  { %3172 = vmatprep.subr.bf16.mxu1 %v3492_v16 }
 0x487   :  { %3174 = vmatpush3.bf16.msra.mxu1 %v3492_v16  ;;  %v880_v23 = vpop.permute.xlu0 %879  ;;  %v885_v35 = vpop.permute.xlu1 %884 }
 0x488   :  { %3176 = vmatprep.subr.bf16.mxu1 %v3504_v19 }
 0x48b   :  { %3178 = vmatpush3.bf16.msra.mxu1 %v3504_v19 }
 0x48c   :  { %3180 = vmatprep.subr.bf16.mxu1 %v3516_v22 }
 0x48f   :  { %3182 = vmatpush3.bf16.msra.mxu1 %v3516_v22 }
 0x490   :  { %3184 = vmatprep.subr.bf16.mxu1 %v3528_v25 }
 0x493   :  { %3186 = vmatpush3.bf16.msra.mxu1 %v3528_v25 }
 0x549   :  { %v2811_v13 = vpop.f32.mrb[12].mxu1 }
 0x54a   :  { %v954_v7 = vpop.f32.mrb[13].mxu1  ;;  %v3820_v11 = vadd.f32 %v2811_v13, %v860_v8  ;;  %v1009_v8 = vld [vmem:[%s4222_s4] sm:$0xff] }
 0x54b   :  { %v3818_v10 = vadd.f32 %v954_v7, %v850_v3  ;;  %v2812_v16 = vpop.f32.mrb[14].mxu1  ;;  %v1006_v3 = vld [vmem:[%s4221_s3 + $0x28] sm:$0xff] }
 0x54c   :  { %v957_v19 = vpop.f32.mrb[15].mxu1  ;;  %v3827_v25 = vadd.f32 %v2812_v16, %v865_v6  ;;  %v1132_v18 = vmul.f32 %v3820_v11, %v3820_v11 }
 0x54d   :  { %v3822_v14 = vadd.f32 %v957_v19, %v855_v5  ;;  %2849 = vmatprep.mubr.f32.mxu0 %v3818_v10  ;;  %v1130_v22 = vmul.f32 %v3818_v10, %v3818_v10  ;;  %v1007_v5 = vld [vmem:[%s4221_s3 + $0x30] sm:$0xff] }
 0x54e   :  { %v1133_v29 = vmul.f32 %v3827_v25, %v3827_v25 }
 0x54f   :  { %v1131_v15 = vmul.f32 %v3822_v14, %v3822_v14  ;;  %2850 = vmatmul.mubr.f32.vlgmr.msra.gmra.mrb[20].mxu0 %v3822_v14  ;;  %2893 = vmatprep.mubr.f32.mxu1 %v1130_v22 }
 0x550   :  { %2852 = vmatprep.mubr.f32.mxu0 %v3820_v11 }
 0x551   :  { %v2815_v20 = vpop.f32.mrb[16].mxu1  ;;  %2894 = vmatmul.mubr.f32.vlgmr.msra.gmra.mrb[20].mxu1 %v1131_v15 }
 0x552   :  { %v970_v21 = vpop.f32.mrb[17].mxu1  ;;  %2896 = vmatprep.mubr.f32.mxu1 %v1132_v18  ;;  %v3840_v31 = vadd.f32 %v2815_v20, %v880_v23 }
 0x553   :  { %v3835_v24 = vadd.f32 %v970_v21, %v870_v12  ;;  %v2816_v28 = vpop.f32.mrb[18].mxu1  ;;  %2853 = vmatmul.mubr.f32.gmra.mrb[22].mxu0 %v3827_v25 }
 0x554   :  { %v973_v32 = vpop.f32.mrb[19].mxu1  ;;  %v3847_v36 = vadd.f32 %v2816_v28, %v885_v35  ;;  %v1136_v38 = vmul.f32 %v3840_v31, %v3840_v31 }
 0x555   :  { %v3842_v33 = vadd.f32 %v973_v32, %v875_v17  ;;  %2855 = vmatprep.mubr.f32.mxu0 %v3835_v24  ;;  %2897 = vmatmul.mubr.f32.gmra.mrb[22].mxu1 %v1133_v29  ;;  %v1134_v34 = vmul.f32 %v3835_v24, %v3835_v24 }
 0x556   :  { %v1137_v39 = vmul.f32 %v3847_v36, %v3847_v36 }
 0x557   :  { %2856 = vmatmul.mubr.f32.gmra.mrb[24].mxu0 %v3842_v33  ;;  %2899 = vmatprep.mubr.f32.mxu1 %v1134_v34  ;;  %v1135_v37 = vmul.f32 %v3842_v33, %v3842_v33 }
 0x558   :  { %2858 = vmatprep.mubr.f32.mxu0 %v3840_v31 }
 0x559   :  { %2900 = vmatmul.mubr.f32.gmra.mrb[24].mxu1 %v1135_v37 }
 0x55a   :  { %2902 = vmatprep.mubr.f32.mxu1 %v1136_v38 }
 0x55b   :  { %2859 = vmatmul.mubr.f32.gmra.mrb[26].mxu0 %v3847_v36 }
 0x55c   :  { %2937 = vmatprep.mubr.f32.mxu0 %v1001_v40 }
 0x55d   :  { %2903 = vmatmul.mubr.f32.gmra.mrb[26].mxu1 %v1137_v39 }
 0x55e   :  { %2965 = vmatprep.mubr.msk.f32.mxu1 %vm284_vm0, %v1009_v8  ;;  %v1023_v8 = vld [vmem:[%s4222_s4 + $0x70] sm:$0xff] }
 0x622   :  { %v2851_v41 = vpop.f32.mrb[20].mxu0 }
 0x623   :  { %v1091_v42 = vpop.f32.mrb[21].mxu0 }
 0x624   :  { %v3187_v43 = vpack.c.bf16 %v2851_v41, %v1091_v42  ;;  %v2895_v44 = vpop.f32.mrb[20].mxu1 }
 0x625   :  { %v1204_v46 = vpop.f32.mrb[21].mxu1 }
 0x626   :  { %v3203_v47 = vpack.c.bf16 %v2895_v44, %v1204_v46  ;;  %v2854_v48 = vpop.f32.mrb[22].mxu0  ;;  %3188 = vmatprep.subr.bf16.mxu0 %v3187_v43 }
 0x627   :  { %v1101_v49 = vpop.f32.mrb[23].mxu0  ;;  %3190 = vmatpush3.bf16.msra.mxu0 %v3187_v43 }
 0x628   :  { %v3191_v50 = vpack.c.bf16 %v2854_v48, %v1101_v49  ;;  %v2898_v51 = vpop.f32.mrb[22].mxu1 }
 0x629   :  { %v1214_v52 = vpop.f32.mrb[23].mxu1 }
 0x62a   :  { %v3207_v54 = vpack.c.bf16 %v2898_v51, %v1214_v52  ;;  %v2857_v55 = vpop.f32.mrb[24].mxu0  ;;  %3192 = vmatprep.subr.bf16.mxu0 %v3191_v50 }
 0x62b   :  { %v1111_v26 = vpop.f32.mrb[25].mxu0  ;;  %3194 = vmatpush3.bf16.msra.mxu0 %v3191_v50 }
 0x62c   :  { %v3195_v9 = vpack.c.bf16 %v2857_v55, %v1111_v26  ;;  %v2901_v56 = vpop.f32.mrb[24].mxu1 }
 0x62d   :  { %v1224_v57 = vpop.f32.mrb[25].mxu1 }
 0x62e   :  { %v3211_v59 = vpack.c.bf16 %v2901_v56, %v1224_v57  ;;  %v2860_v30 = vpop.f32.mrb[26].mxu0  ;;  %3196 = vmatprep.subr.bf16.mxu0 %v3195_v9 }
 0x62f   :  { %v1121_v60 = vpop.f32.mrb[27].mxu0  ;;  %3198 = vmatpush3.bf16.msra.mxu0 %v3195_v9 }
 0x630   :  { %v3199_v27 = vpack.c.bf16 %v2860_v30, %v1121_v60  ;;  %v2904_v61 = vpop.f32.mrb[26].mxu1  ;;  %v1010_v30 = vld [vmem:[%s4222_s4 + $0x8] sm:$0xff]  ;;  %v1011_v60 = vld [vmem:[%s4222_s4 + $0x10] sm:$0xff] }
 0x631   :  { %v1234_v62 = vpop.f32.mrb[27].mxu1 }
 0x632   :  { %v3215_v63 = vpack.c.bf16 %v2904_v61, %v1234_v62  ;;  %3200 = vmatprep.subr.bf16.mxu0 %v3199_v27  ;;  %v1013_v61 = vld [vmem:[%s4222_s4 + $0x20] sm:$0xff]  ;;  %v1014_v62 = vld [vmem:[%s4222_s4 + $0x28] sm:$0xff] }
 0x633   :  { %3202 = vmatpush3.bf16.msra.mxu0 %v3199_v27  ;;  %v1012_v27 = vld [vmem:[%s4222_s4 + $0x18] sm:$0xff] }
 0x634   :  { %3204 = vmatprep.subr.bf16.mxu0 %v3203_v47 }
 0x637   :  { %3206 = vmatpush3.bf16.msra.mxu0 %v3203_v47 }
 0x638   :  { %3208 = vmatprep.subr.bf16.mxu0 %v3207_v54 }
 0x63b   :  { %3210 = vmatpush3.bf16.msra.mxu0 %v3207_v54 }
 0x63c   :  { %3212 = vmatprep.subr.bf16.mxu0 %v3211_v59 }
 0x63f   :  { %3214 = vmatpush3.bf16.msra.mxu0 %v3211_v59 }
 0x640   :  { %3216 = vmatprep.subr.bf16.mxu0 %v3215_v63 }
 0x643   :  { %3218 = vmatpush3.bf16.msra.mxu0 %v3215_v63  ;;  %v1015_v63 = vld [vmem:[%s4222_s4 + $0x30] sm:$0xff] }
 0x644   :  { %2989 = vmatprep.subr.mxu0 %v3614_v58 }
 0x646   :  { %2938 = vmatmul.mubr.f32.vlgmr.msra.gmra.mrb[28].mxu0 %v1002_v0  ;;  %v1016_v0 = vld [vmem:[%s4222_s4 + $0x38] sm:$0xff] }
 0x647   :  { %2940 = vmatprep.mubr.f32.mxu0 %v1003_v1  ;;  %2990 = vmatpush3.msra.mxu0 %v3614_v58  ;;  %v1008_v58 = vld [vmem:[%s4221_s3 + $0x38] sm:$0xff]  ;;  %v1017_v1 = vld [vmem:[%s4222_s4 + $0x40] sm:$0xff] }
 0x64a   :  { %2941 = vmatmul.mubr.f32.gmra.mrb[30].mxu0 %v1004_v2  ;;  %v1018_v2 = vld [vmem:[%s4222_s4 + $0x48] sm:$0xff] }
 0x64b   :  { %2943 = vmatprep.mubr.f32.mxu0 %v1005_v4  ;;  %v1019_v4 = vld [vmem:[%s4222_s4 + $0x50] sm:$0xff] }
 0x64e   :  { %2944 = vmatmul.mubr.f32.gmra.mrb[32].mxu0 %v1006_v3  ;;  %v1020_v3 = vld [vmem:[%s4222_s4 + $0x58] sm:$0xff] }
 0x64f   :  { %2946 = vmatprep.mubr.f32.mxu0 %v1007_v5  ;;  %v1021_v5 = vld [vmem:[%s4222_s4 + $0x60] sm:$0xff] }
 0x652   :  { %2947 = vmatmul.mubr.f32.gmra.mrb[34].mxu0 %v1008_v58  ;;  %v1022_v58 = vld [vmem:[%s4222_s4 + $0x68] sm:$0xff] }
 0x719   :  { %v2939_v13 = vpop.f32.mrb[28].mxu0 }
 0x71a   :  { %v1349_v6 = vmul.f32 0.03125, %v2939_v13  ;;  %v1309_v7 = vpop.f32.mrb[29].mxu0  ;;  %v1024_v13 = vld [vmem:[%s4222_s4 + $0x78] sm:$0xff] }
 0x71b   :  { %v1348_v16 = vmul.f32 0.03125, %v1309_v7  ;;  %v1572_v7 = vpop.permute.xlu0 %1571 }
 0x71c   :  { %v1357_v21 = vmul.f32 %v1349_v6, %v1349_v6 }
 0x71d   :  { %v3219_v19 = vpack.c.bf16 %v1349_v6, %v1348_v16  ;;  %v2942_v12 = vpop.f32.mrb[30].mxu0  ;;  %v1356_v29 = vmul.f32 %v1348_v16, %v1348_v16 }
 0x71e   :  { %v1351_v22 = vmul.f32 0.03125, %v2942_v12  ;;  %v1319_v15 = vpop.f32.mrb[31].mxu0 }
 0x71f   :  { %v1350_v17 = vmul.f32 0.03125, %v1319_v15  ;;  %3220 = vmatprep.subr.bf16.mxu1 %v3219_v19  ;;  %v1582_v15 = vpop.permute.xlu0 %1581 }
 0x720   :  { %3222 = vmatpush3.bf16.msra.mxu1 %v3219_v19  ;;  %v1359_v38 = vmul.f32 %v1351_v22, %v1351_v22  ;;  %v1577_v19 = vpop.permute.xlu1 %1576 }
 0x721   :  { %v3223_v18 = vpack.c.bf16 %v1351_v22, %v1350_v17  ;;  %v2945_v20 = vpop.f32.mrb[32].mxu0  ;;  %v1358_v42 = vmul.f32 %v1350_v17, %v1350_v17 }
 0x722   :  { %v1353_v23 = vmul.f32 0.03125, %v2945_v20  ;;  %v1329_v28 = vpop.f32.mrb[33].mxu0 }
 0x723   :  { %v1352_v32 = vmul.f32 0.03125, %v1329_v28  ;;  %3224 = vmatprep.subr.bf16.mxu1 %v3223_v18 }
 0x724   :  { %v1361_v34 = vsub.f32 %v1353_v23, %v1357_v21  ;;  %3226 = vmatpush3.bf16.msra.mxu1 %v3223_v18  ;;  %v1587_v20 = vpop.permute.xlu1 %1586  ;;  %v1592_v23 = vpop.permute.xlu0 %1591 }
 0x725   :  { %v1360_v35 = vsub.f32 %v1352_v32, %v1356_v29  ;;  %v2948_v37 = vpop.f32.mrb[34].mxu0 }
 0x726   :  { %v1365_v39 = vmax.f32 %v1361_v34, 0.0  ;;  %v1355_v40 = vmul.f32 0.03125, %v2948_v37  ;;  %v1339_v41 = vpop.f32.mrb[35].mxu0 }
 0x727   :  { %v1364_v43 = vmax.f32 %v1360_v35, 0.0  ;;  %v1354_v44 = vmul.f32 0.03125, %v1339_v41 }
 0x728   :  { %v1369_v46 = vadd.f32 1e-06, %v1365_v39  ;;  %v1363_v47 = vsub.f32 %v1355_v40, %v1359_v38  ;;  %v1597_v29 = vpop.permute.xlu1 %1596  ;;  %v1602_v38 = vpop.permute.xlu0 %1601 }
 0x729   :  { %v1368_v48 = vadd.f32 1e-06, %v1364_v43  ;;  %v1362_v49 = vsub.f32 %v1354_v44, %v1358_v42 }
 0x72a   :  { %3284 = vrsqrt.f32 %v1369_v46  ;;  %v1367_v50 = vmax.f32 %v1363_v47, 0.0 }
 0x72b   :  { %3286 = vrsqrt.f32 %v1368_v48  ;;  %v1366_v51 = vmax.f32 %v1362_v49, 0.0 }
 0x72c   :  { %v1371_v52 = vadd.f32 1e-06, %v1367_v50  ;;  %v1607_v44 = vpop.permute.xlu1 %1606  ;;  %v1628_v50 = vpop.permute.xlu0 %1627 }
 0x72d   :  { %v1370_v54 = vadd.f32 1e-06, %v1366_v51 }
 0x72e   :  { %3288 = vrsqrt.f32 %v1371_v52 }
 0x72f   :  { %3290 = vrsqrt.f32 %v1370_v54 }
 0x734   :  { %v3285_v55 = vpop.eup %3284 }
 0x735   :  { %v3287_v26 = vpop.eup %3286 }
 0x736   :  { %v3227_v9 = vpack.c.bf16 %v3285_v55, %v3287_v26  ;;  %v1633_v26 = vpop.permute.xlu1 %1632 }
 0x738   :  { %v3289_v56 = vpop.eup %3288  ;;  %3228 = vmatprep.subr.bf16.mxu1 %v3227_v9 }
 0x739   :  { %v3291_v57 = vpop.eup %3290  ;;  %3230 = vmatpush3.bf16.msra.mxu1 %v3227_v9 }
 0x73a   :  { %v3231_v59 = vpack.c.bf16 %v3289_v56, %v3291_v57 }
 0x73c   :  { %3232 = vmatprep.subr.bf16.mxu1 %v3231_v59 }
 0x73d   :  { %3234 = vmatpush3.bf16.msra.mxu1 %v3231_v59 }
 0x73e   :  { %2102 = vmatprep.subr.bf16.mxu1 %v3330_v53 }
 0x740   :  { %2966 = vmatmul.mubr.msk.f32.vlgmr.msra.gmra.mrb[28].mxu1 %vm284_vm0, %v1010_v30 }
 0x741   :  { %2968 = vmatprep.mubr.msk.f32.mxu1 %vm284_vm0, %v1011_v60  ;;  %v1638_v60 = vpop.permute.xlu0 %1637 }
 0x744   :  { %2969 = vmatmul.mubr.msk.f32.gmra.mrb[30].mxu1 %vm284_vm0, %v1012_v27 }
 0x745   :  { %2971 = vmatprep.mubr.msk.f32.mxu1 %vm284_vm0, %v1013_v61 }
 0x748   :  { %2972 = vmatmul.mubr.msk.f32.gmra.mrb[32].mxu1 %vm284_vm0, %v1014_v62 }
 0x749   :  { %2974 = vmatprep.mubr.msk.f32.mxu1 %vm284_vm0, %v1015_v63  ;;  %v1643_v63 = vpop.permute.xlu1 %1642 }
 0x74c   :  { %2975 = vmatmul.mubr.msk.f32.gmra.mrb[34].mxu1 %vm284_vm0, %v1016_v0 }
 0x74d   :  { %2977 = vmatprep.mubr.msk.f32.mxu1 %vm284_vm0, %v1017_v1 }
 0x750   :  { %2978 = vmatmul.mubr.msk.f32.gmra.mrb[36].mxu1 %vm284_vm0, %v1018_v2  ;;  %v1648_v2 = vpop.permute.xlu0 %1647 }
 0x751   :  { %2980 = vmatprep.mubr.msk.f32.mxu1 %vm284_vm0, %v1019_v4 }
 0x754   :  { %2981 = vmatmul.mubr.msk.f32.gmra.mrb[38].mxu1 %vm284_vm0, %v1020_v3  ;;  %v1653_v3 = vpop.permute.xlu1 %1652 }
 0x755   :  { %2983 = vmatprep.mubr.msk.f32.mxu1 %vm284_vm0, %v1021_v5 }
 0x758   :  { %2984 = vmatmul.mubr.msk.f32.gmra.mrb[40].mxu1 %vm284_vm0, %v1022_v58  ;;  %v1658_v58 = vpop.permute.xlu0 %1657 }
 0x759   :  { %2986 = vmatprep.mubr.msk.f32.mxu1 %vm284_vm0, %v1023_v8 }
 0x75c   :  { %2987 = vmatmul.mubr.msk.f32.gmra.mrb[42].mxu1 %vm284_vm0, %v1024_v13 }
 0x813   :  { %v2967_v6 = vpop.f32.mrb[28].mxu1 }
 0x814   :  { %v1490_v16 = vpop.f32.mrb[29].mxu1 }
 0x817   :  { %v2970_v12 = vpop.f32.mrb[30].mxu1 }
 0x818   :  { %v1500_v22 = vpop.f32.mrb[31].mxu1 }
 0x81b   :  { %v2973_v17 = vpop.f32.mrb[32].mxu1 }
 0x81c   :  { %v1510_v18 = vpop.f32.mrb[33].mxu1 }
 0x81f   :  { %v2976_v21 = vpop.f32.mrb[34].mxu1 }
 0x820   :  { %v1520_v28 = vpop.f32.mrb[35].mxu1 }
 0x823   :  { %v2979_v32 = vpop.f32.mrb[36].mxu1 }
 0x824   :  { %v1610_v34 = vmul.f32 %v2979_v32, %v1577_v19  ;;  %v1530_v35 = vpop.f32.mrb[37].mxu1  ;;  %v3325_v19 = vld [vmem:[%s4237_s5 + $0x8] sm:$0xff] }
 0x825   :  { %v1609_v37 = vmul.f32 %v1572_v7, %v1530_v35 }
 0x826   :  { %v1618_v39 = vmul.f32 %v2967_v6, %v1610_v34  ;;  %v1663_v6 = vpop.permute.xlu1 %1662 }
 0x827   :  { %v1617_v40 = vmul.f32 %v1609_v37, %v1490_v16  ;;  %v2982_v41 = vpop.f32.mrb[38].mxu1  ;;  %2991 = vmatprep.mubr.msk.f32.mxu0 %vm623_vm1, %v1609_v37  ;;  %v3324_v16 = vld [vmem:[%s4237_s5] sm:$0xff] }
 0x828   :  { %v1612_v42 = vmul.f32 %v2982_v41, %v1587_v20  ;;  %v1540_v43 = vpop.f32.mrb[39].mxu1  ;;  %2992 = vmatmul.mubr.msk.f32.vlgmr.msra.gmra.mrb[36].mxu0 %vm623_vm1, %v1610_v34  ;;  %v1666_v0 = vsub.f32 %v1633_v26, %v1618_v39  ;;  %v3245_v20 = vld [vmem:[%s4223_s17 + $0x8] sm:$0xff]  }
 0x829   :  { %v1611_v46 = vmul.f32 %v1582_v15, %v1540_v43  ;;  %v1665_v61 = vsub.f32 %v1628_v50, %v1617_v40  ;;  %v3327_v15 = vld [vmem:[%s4237_s5 + $0x18] sm:$0xff] }
 0x82a   :  { %v1620_v47 = vmul.f32 %v2970_v12, %v1612_v42  ;;  %v2175_v12 = vpack.c.bf16 %v3325_v19, %v3324_v16 }
 0x82b   :  { %v1619_v48 = vmul.f32 %v1611_v46, %v1500_v22  ;;  %v2985_v49 = vpop.f32.mrb[40].mxu1  ;;  %2994 = vmatprep.mubr.msk.f32.mxu0 %vm623_vm1, %v1611_v46  ;;  %v3326_v22 = vld [vmem:[%s4237_s5 + $0x10] sm:$0xff] }
 0x82c   :  { %v1614_v51 = vmul.f32 %v2985_v49, %v1597_v29  ;;  %v1550_v52 = vpop.f32.mrb[41].mxu1  ;;  %2995 = vmatmul.mubr.msk.f32.gmra.mrb[38].mxu0 %vm623_vm1, %v1612_v42  ;;  %v1668_v4 = vsub.f32 %v1643_v63, %v1620_v47  ;;  %3015 = vmatprep.subr.bf16.mxu0 %v2175_v12 }
 0x82d   :  { %v1613_v54 = vmul.f32 %v1592_v23, %v1550_v52  ;;  %v1667_v1 = vsub.f32 %v1638_v60, %v1619_v48  ;;  %3016 = vmatpush3.bf16.msra.mxu0 %v2175_v12  ;;  %v3247_v23 = vld [vmem:[%s4223_s17 + $0x18] sm:$0xff]  }
 0x82e   :  { %v1622_v55 = vmul.f32 %v2973_v17, %v1614_v51  ;;  %v2176_v17 = vpack.c.bf16 %v3327_v15, %v3326_v22 }
 0x82f   :  { %v1621_v9 = vmul.f32 %v1613_v54, %v1510_v18  ;;  %v2988_v56 = vpop.f32.mrb[42].mxu1  ;;  %2997 = vmatprep.mubr.msk.f32.mxu0 %vm623_vm1, %v1613_v54  ;;  %v3244_v18 = vld [vmem:[%s4223_s17] sm:$0xff]  }
 0x830   :  { %v1616_v57 = vmul.f32 %v2988_v56, %v1607_v44  ;;  %v1560_v59 = vpop.f32.mrb[43].mxu1  ;;  %2998 = vmatmul.mubr.msk.f32.gmra.mrb[40].mxu0 %vm623_vm1, %v1614_v51  ;;  %v1670_v8 = vsub.f32 %v1653_v3, %v1622_v55  ;;  %3017 = vmatprep.subr.bf16.mxu0 %v2176_v17 }
 0x831   :  { %v1615_v30 = vmul.f32 %v1602_v38, %v1560_v59  ;;  %v1669_v5 = vsub.f32 %v1648_v2, %v1621_v9  ;;  %3018 = vmatpush3.bf16.msra.mxu0 %v2176_v17 }
 0x832   :  { %v1624_v27 = vmul.f32 %v2976_v21, %v1616_v57  ;;  %v3246_v21 = vld [vmem:[%s4223_s17 + $0x10] sm:$0xff]  }
 0x833   :  { %v1623_v62 = vmul.f32 %v1615_v30, %v1520_v28  ;;  %3000 = vmatprep.mubr.msk.f32.mxu0 %vm623_vm1, %v1615_v30 }
 0x834   :  { %3001 = vmatmul.mubr.msk.f32.gmra.mrb[42].mxu0 %vm623_vm1, %v1616_v57  ;;  %v1672_v7 = vsub.f32 %v1663_v6, %v1624_v27 }
 0x835   :  { %3003 = vmatprep.mubr.msk.f32.mxu0 %vm623_vm1, %v1665_v61  ;;  %v1671_v13 = vsub.f32 %v1658_v58, %v1623_v62 }
 0x838   :  { %3004 = vmatmul.mubr.msk.f32.gmra.mrb[44].mxu0 %vm623_vm1, %v1666_v0 }
 0x839   :  { %3006 = vmatprep.mubr.msk.f32.mxu0 %vm623_vm1, %v1667_v1 }
 0x83c   :  { %3007 = vmatmul.mubr.msk.f32.gmra.mrb[46].mxu0 %vm623_vm1, %v1668_v4 }
 0x83d   :  { %3009 = vmatprep.mubr.msk.f32.mxu0 %vm623_vm1, %v1669_v5 }
 0x840   :  { %3010 = vmatmul.mubr.msk.f32.gmra.mrb[48].mxu0 %vm623_vm1, %v1670_v8 }
 0x841   :  { %3012 = vmatprep.mubr.msk.f32.mxu0 %vm623_vm1, %v1671_v13 }
 0x844   :  { %3013 = vmatmul.mubr.msk.f32.gmra.mrb[50].mxu0 %vm623_vm1, %v1672_v7 }
 0x845   :  { %3019 = vmatprep.mubr.msk.bf16.mxu0 %vm2245_vm3, %v3244_v18 }
 0x848   :  { %3020 = vmatmul.mubr.msk.bf16.vlgmr.msra.gmra.mrb[52].mxu0 %vm2245_vm3, %v3245_v20 }
 0x849   :  { %3023 = vmatprep.mubr.msk.bf16.mxu0 %vm2245_vm3, %v3246_v21 }
 0x850   :  { %3024 = vmatmul.mubr.msk.bf16.gmra.mrb[56].mxu0 %vm2245_vm3, %v3247_v23 }
 0x8fb   :  { %v2993_v28 = vpop.f32.mrb[36].mxu0 }
 0x8fc   :  { %v1787_v29 = vpop.f32.mrb[37].mxu0  ;;  %v1867_v40 = vmul.f32 %v2993_v28, %v3822_v14 }
 0x8fd   :  { %v1866_v41 = vmul.f32 %v1787_v29, %v3818_v10 }
 0x8ff   :  { %v2996_v32 = vpop.f32.mrb[38].mxu0 }
 0x900   :  { %v1797_v34 = vpop.f32.mrb[39].mxu0  ;;  %v1869_v47 = vmul.f32 %v2996_v32, %v3827_v25 }
 0x901   :  { %v1868_v49 = vmul.f32 %v1797_v34, %v3820_v11 }
 0x903   :  { %v2999_v35 = vpop.f32.mrb[40].mxu0 }
 0x904   :  { %v1807_v37 = vpop.f32.mrb[41].mxu0  ;;  %v1871_v14 = vmul.f32 %v2999_v35, %v3842_v33 }
 0x905   :  { %v1870_v10 = vmul.f32 %v1807_v37, %v3835_v24 }
 0x907   :  { %v3002_v38 = vpop.f32.mrb[42].mxu0 }
 0x908   :  { %v1817_v39 = vpop.f32.mrb[43].mxu0  ;;  %v1873_v11 = vmul.f32 %v3002_v38, %v3847_v36 }
 0x909   :  { %v1872_v60 = vmul.f32 %v1817_v39, %v3840_v31 }
 0x90b   :  { %v3005_v42 = vpop.f32.mrb[44].mxu0 }
 0x90c   :  { %v1875_v43 = vadd.f32 %v3005_v42, %v1867_v40  ;;  %v1827_v44 = vpop.f32.mrb[45].mxu0 }
 0x90d   :  { %v1874_v46 = vadd.f32 %v1866_v41, %v1827_v44 }
 0x90e   :  { %v2414_v48 = vmul.f32 -1.442695, %v1875_v43 }
 0x90f   :  { %v2413_v50 = vmul.f32 -1.442695, %v1874_v46  ;;  %v3008_v51 = vpop.f32.mrb[46].mxu0 }
 0x910   :  { %3292 = vpow2.f32 %v2414_v48  ;;  %v1877_v52 = vadd.f32 %v3008_v51, %v1869_v47  ;;  %v1837_v54 = vpop.f32.mrb[47].mxu0  ;;  %v1947_v47 = vld [vmem:[%s4224_s16 + $0x8] sm:$0xff]  ;;  %v1946_v48 = vld [vmem:[%s4224_s16] sm:$0xff] }
 0x911   :  { %3294 = vpow2.f32 %v2413_v50  ;;  %v1876_v55 = vadd.f32 %v1868_v49, %v1837_v54  ;;  %v1949_v49 = vld [vmem:[%s4224_s16 + $0x18] sm:$0xff]  ;;  %v1948_v50 = vld [vmem:[%s4224_s16 + $0x10] sm:$0xff]  ;;  %v1951_v51 = vld [vmem:[%s4224_s16 + $0x28] sm:$0xff] }
 0x912   :  { %v2416_v26 = vmul.f32 -1.442695, %v1877_v52  ;;  %v3250_v54 = vld [vmem:[%s4225_s15 + $0x4] ss:$8 sps:$4 sm:$0xff]  }
 0x913   :  { %v2415_v9 = vmul.f32 -1.442695, %v1876_v55  ;;  %v3011_v56 = vpop.f32.mrb[48].mxu0  ;;  %2429 = vmatprep.mubr.msk.bf16.mxu1 %vm284_vm0, %v3250_v54  ;;  %v3253_v54 = vld [vmem:[%s4225_s15 + $0x10] ss:$8 sps:$4 sm:$0xff]  }
 0x914   :  { %3296 = vpow2.f32 %v2416_v26  ;;  %v1879_v57 = vadd.f32 %v3011_v56, %v1871_v14  ;;  %v1847_v25 = vpop.f32.mrb[49].mxu0  ;;  %v1952_v14 = vld [vmem:[%s4224_s16 + $0x30] sm:$0xff] }
 0x915   :  { %3298 = vpow2.f32 %v2415_v9  ;;  %v1878_v59 = vadd.f32 %v1870_v10, %v1847_v25  ;;  %v2178_v10 = vld [vmem:[%s4226_s18 + $0x8] sm:$0xff]  ;;  %v2180_v25 = vld [vmem:[%s4226_s18 + $0x18] sm:$0xff] }
 0x916   :  { %v2418_v30 = vmul.f32 -1.442695, %v1879_v57 }
 0x917   :  { %v2417_v27 = vmul.f32 -1.442695, %v1878_v59  ;;  %v3014_v61 = vpop.f32.mrb[50].mxu0 }
 0x918   :  { %3300 = vpow2.f32 %v2418_v30  ;;  %v1881_v62 = vadd.f32 %v3014_v61, %v1873_v11  ;;  %v1857_v33 = vpop.f32.mrb[51].mxu0  ;;  %v2179_v11 = vld [vmem:[%s4226_s18 + $0x10] sm:$0xff]  ;;  %v2181_v61 = vld [vmem:[%s4226_s18 + $0x20] sm:$0xff] }
 0x919   :  { %3302 = vpow2.f32 %v2417_v27  ;;  %v1880_v63 = vadd.f32 %v1872_v60, %v1857_v33  ;;  %v2182_v60 = vld [vmem:[%s4226_s18 + $0x28] sm:$0xff]  ;;  %v2184_v33 = vld [vmem:[%s4226_s18 + $0x38] sm:$0xff] }
 0x91a   :  { %v3293_v24 = vpop.eup %3292  ;;  %v2420_v0 = vmul.f32 -1.442695, %v1881_v62 }
 0x91b   :  { %v3295_v1 = vpop.eup %3294  ;;  %v1907_v2 = vadd.f32 1.0, %v3293_v24  ;;  %v2419_v4 = vmul.f32 -1.442695, %v1880_v63  ;;  %v4081_v26 = vpop.f32.mrb[52].mxu0  ;;  %v2183_v24 = vld [vmem:[%s4226_s18 + $0x30] sm:$0xff] }
 0x91c   :  { %v1906_v3 = vadd.f32 1.0, %v3295_v1  ;;  %3304 = vpow2.f32 %v2420_v0  ;;  %v4086_v9 = vpop.f32.mrb[53].mxu0 }
 0x91d   :  { %3306 = vrcp.f32 %v1907_v2  ;;  %v4088_v56 = vpop.f32.mrb[54].mxu0 }
 0x91e   :  { %v3297_v5 = vpop.eup %3296  ;;  %3308 = vrcp.f32 %v1906_v3 }
 0x91f   :  { %v3299_v36 = vpop.eup %3298  ;;  %v1909_v58 = vadd.f32 1.0, %v3297_v5  ;;  %3310 = vpow2.f32 %v2419_v4 }
 0x920   :  { %v1908_v31 = vadd.f32 1.0, %v3299_v36  ;;  %v3328_v36 = vld [vmem:[%s4219_s7] ss:$0 sm:$0xff] }
 0x921   :  { %3312 = vrcp.f32 %v1909_v58 }
 0x922   :  { %v3301_v8 = vpop.eup %3300  ;;  %3314 = vrcp.f32 %v1908_v31 }
 0x923   :  { %v3303_v13 = vpop.eup %3302  ;;  %v1911_v6 = vadd.f32 1.0, %v3301_v8 }
 0x924   :  { %v1910_v7 = vadd.f32 1.0, %v3303_v13 }
 0x925   :  { %3316 = vrcp.f32 %v1911_v6 }
 0x926   :  { %v3305_v16 = vpop.eup %3304  ;;  %3318 = vrcp.f32 %v1910_v7 }
 0x927   :  { %v3307_v19 = vpop.eup %3306  ;;  %v1913_v12 = vadd.f32 1.0, %v3305_v16 }
 0x928   :  { %v3309_v22 = vpop.eup %3308  ;;  %v3997_v15 = vmul.f32 %v3307_v19, %v1875_v43 }
 0x929   :  { %v3311_v17 = vpop.eup %3310  ;;  %v3999_v18 = vmul.f32 %v3309_v22, %v1874_v46  ;;  %3320 = vrcp.f32 %v1913_v12 }
 0x92a   :  { %v1912_v20 = vadd.f32 1.0, %v3311_v17  ;;  %1956 = vrot.lane.b32.xlu1 %v3997_v15, %s3331_s23 }
 0x92b   :  { %v3313_v21 = vpop.eup %3312  ;;  %v2006_v23 = vpack.c.bf16 %v3997_v15, %v3999_v18  ;;  %1954 = vrot.lane.b32.xlu0 %v3999_v18, %s3331_s23 }
 0x92c   :  { %v3315_v28 = vpop.eup %3314  ;;  %v4007_v29 = vmul.f32 %v3313_v21, %v1877_v52  ;;  %3322 = vrcp.f32 %v1912_v20  ;;  %v1950_v52 = vld [vmem:[%s4224_s16 + $0x20] sm:$0xff] }
 0x92d   :  { %v4009_v32 = vmul.f32 %v3315_v28, %v1876_v55  ;;  %v1953_v55 = vld [vmem:[%s4224_s16 + $0x38] sm:$0xff] }
 0x92e   :  { %1960 = vrot.lane.b32.xlu1 %v4007_v29, %s3331_s23 }
 0x92f   :  { %v3317_v34 = vpop.eup %3316  ;;  %v2007_v35 = vpack.c.bf16 %v4007_v29, %v4009_v32  ;;  %1958 = vrot.lane.b32.xlu0 %v4009_v32, %s3331_s23 }
 0x930   :  { %v3319_v37 = vpop.eup %3318  ;;  %v4017_v38 = vmul.f32 %v3317_v34, %v1879_v57  ;;  %v2177_v57 = vld [vmem:[%s4226_s18] sm:$0xff] }
 0x931   :  { %v4019_v39 = vmul.f32 %v3319_v37, %v1878_v59  ;;  %v4096_v59 = vpop.f32.mrb[55].mxu0 }
 0x932   :  { %1964 = vrot.lane.b32.xlu1 %v4017_v38, %s3331_s23  ;;  %v4101_v30 = vpop.f32.mrb[56].mxu0 }
 0x933   :  { %v3321_v40 = vpop.eup %3320  ;;  %v2008_v41 = vpack.c.bf16 %v4017_v38, %v4019_v39  ;;  %1962 = vrot.lane.b32.xlu0 %v4019_v39, %s3331_s23  ;;  %v4106_v27 = vpop.f32.mrb[57].mxu0 }
 0x934   :  { %v4027_v42 = vmul.f32 %v3321_v40, %v1881_v62  ;;  %v4111_v62 = vpop.f32.mrb[58].mxu0 }
 0x936   :  { %v3323_v43 = vpop.eup %3322  ;;  %1968 = vrot.lane.b32.xlu1 %v4027_v42, %s3331_s23 }
 0x937   :  { %v4031_v44 = vmul.f32 %v3323_v43, %v1880_v63  ;;  %v4116_v63 = vpop.f32.mrb[59].mxu0 }
 0x939   :  { %v2009_v46 = vpack.c.bf16 %v4027_v42, %v4031_v44  ;;  %1966 = vrot.lane.b32.xlu0 %v4031_v44, %s3331_s23 }
 0x93a   :  { %1980 = vrot.lane.b32.xlu1 %v3997_v15, %s3332_s25  ;;  %v3329_v15 = vld [vmem:[%s4220_s8] ss:$0 sm:$0xff] }
 0x93d   :  { %1978 = vrot.lane.b32.xlu0 %v3999_v18, %s3332_s25 }
 0x93e   :  { %1984 = vrot.lane.b32.xlu1 %v4007_v29, %s3332_s25 }
 0x941   :  { %1982 = vrot.lane.b32.xlu0 %v4009_v32, %s3332_s25 }
 0x942   :  { %1988 = vrot.lane.b32.xlu1 %v4017_v38, %s3332_s25 }
 0x945   :  { %1986 = vrot.lane.b32.xlu0 %v4019_v39, %s3332_s25 }
 0x946   :  { %1992 = vrot.lane.b32.xlu1 %v4027_v42, %s3332_s25 }
 0x949   :  { %1990 = vrot.lane.b32.xlu0 %v4031_v44, %s3332_s25 }
 0x94a   :  { %2021 = vperm.xlu1 %3239, %v1947_v47  }
 0x94d   :  { %2016 = vperm.xlu0 %3238, %v1946_v48  }
 0x94e   :  { %2031 = vperm.xlu1 %3239, %v1949_v49  }
 0x951   :  { %2026 = vperm.xlu0 %3238, %v1948_v50  }
 0x952   :  { %2041 = vperm.xlu1 %3239, %v1951_v51   ;;  %v3248_v51 = vld [vmem:[%s4225_s15] ss:$8 sps:$4 sm:$0xff]  }
 0x955   :  { %2036 = vperm.xlu0 %3238, %v1950_v52   ;;  %v3251_v52 = vld [vmem:[%s4225_s15 + $0x14] ss:$8 sps:$4 sm:$0xff]  }
 0x956   :  { %2051 = vperm.xlu1 %3239, %v1953_v55   ;;  %v3256_v55 = vld [vmem:[%s4225_s15 + $0x20] ss:$8 sps:$4 sm:$0xff]  }
 0x959   :  { %2046 = vperm.xlu0 %3238, %v1952_v14   ;;  %v3257_v14 = vld [vmem:[%s4225_s15 + $0x34] ss:$8 sps:$4 sm:$0xff]  }
 0x95a   :  { %2192 = vperm.xlu1 %3239, %v2178_v10   ;;  %v3259_v10 = vld [vmem:[%s4225_s15 + $0x30] ss:$8 sps:$4 sm:$0xff]  }
 0x95d   :  { %2187 = vperm.xlu0 %3238, %v2177_v57  }
 0x95e   :  { %2202 = vperm.xlu1 %3239, %v2180_v25  }
 0x961   :  { %2197 = vperm.xlu0 %3238, %v2179_v11  }
 0x962   :  { %2212 = vperm.xlu1 %3239, %v2182_v60  }
 0x965   :  { %2207 = vperm.xlu0 %3238, %v2181_v61  }
 0x966   :  { %2222 = vperm.xlu1 %3239, %v2184_v33  }
 0x969   :  { %2217 = vperm.xlu0 %3238, %v2183_v24  }
 0x99c   :  { %v1957_v0 = vpop.permute.xlu1 %1956 }
 0x99d   :  { %v1971_v1 = vmul.f32 %v3777_v45, %v1957_v0  ;;  %v1955_v2 = vpop.permute.xlu0 %1954 }
 0x99e   :  { %v1970_v4 = vmul.f32 %v3777_v45, %v1955_v2 }
 0x9a0   :  { %v2002_v3 = vpack.c.bf16 %v1971_v1, %v1970_v4  ;;  %v1961_v5 = vpop.permute.xlu1 %1960 }
 0x9a1   :  { %v1973_v58 = vmul.f32 %v3328_v36, %v1961_v5  ;;  %v1959_v31 = vpop.permute.xlu0 %1958 }
 0x9a2   :  { %v1972_v8 = vmul.f32 %v3328_v36, %v1959_v31  ;;  %2103 = vmatpush1.bf16.msra.mxu1 %v2002_v3 }
 0x9a3   :  { %2104 = vmatprep.subr.bf16.mxu1 %v3330_v53 }
 0x9a4   :  { %v2003_v13 = vpack.c.bf16 %v1973_v58, %v1972_v8  ;;  %v1965_v6 = vpop.permute.xlu1 %1964 }
 0x9a5   :  { %v1975_v7 = vmul.f32 %v3328_v36, %v1965_v6  ;;  %v1963_v16 = vpop.permute.xlu0 %1962 }
 0x9a6   :  { %v1974_v19 = vmul.f32 %v3328_v36, %v1963_v16  ;;  %2105 = vmatpush1.bf16.msra.mxu1 %v2003_v13 }
 0x9a7   :  { %2106 = vmatprep.subr.bf16.mxu1 %v3330_v53 }
 0x9a8   :  { %v2004_v45 = vpack.c.bf16 %v1975_v7, %v1974_v19  ;;  %v1969_v12 = vpop.permute.xlu1 %1968 }
 0x9a9   :  { %v1977_v22 = vmul.f32 %v3328_v36, %v1969_v12 }
 0x9aa   :  { %2107 = vmatpush1.bf16.msra.mxu1 %v2004_v45 }
 0x9ab   :  { %v1967_v17 = vpop.permute.xlu0 %1966  ;;  %2108 = vmatprep.subr.bf16.mxu1 %v3330_v53 }
 0x9ac   :  { %v1976_v20 = vmul.f32 %v3328_v36, %v1967_v17  ;;  %v1981_v28 = vpop.permute.xlu1 %1980 }
 0x9ad   :  { %v1995_v18 = vmul.f32 %v3329_v15, %v1981_v28 }
 0x9ae   :  { %v2005_v21 = vpack.c.bf16 %v1977_v22, %v1976_v20 }
 0x9af   :  { %v1979_v34 = vpop.permute.xlu0 %1978 }
 0x9b0   :  { %2109 = vmatpush1.bf16.msra.mxu1 %v2005_v21  ;;  %v1985_v37 = vpop.permute.xlu1 %1984 }
 0x9b1   :  { %2110 = vmatprep.subr.bf16.mxu1 %v3330_v53  ;;  %v1997_v43 = vmul.f32 %v3329_v15, %v1985_v37 }
 0x9b3   :  { %v1983_v40 = vpop.permute.xlu0 %1982 }
 0x9b4   :  { %2111 = vmatpush1.bf16.msra.mxu1 %v2006_v23  ;;  %v1994_v23 = vmul.f32 %v3329_v15, %v1979_v34  ;;  %v1989_v29 = vpop.permute.xlu1 %1988  ;;  %v1996_v38 = vmul.f32 %v3329_v15, %v1983_v40 }
 0x9b5   :  { %2112 = vmatprep.subr.bf16.mxu1 %v3330_v53 }
 0x9b6   :  { %v2011_v39 = vpack.c.bf16 %v1997_v43, %v1996_v38 }
 0x9b7   :  { %v1987_v32 = vpop.permute.xlu0 %1986 }
 0x9b8   :  { %2113 = vmatpush1.bf16.msra.mxu1 %v2007_v35  ;;  %v2010_v35 = vpack.c.bf16 %v1995_v18, %v1994_v23  ;;  %v1998_v47 = vmul.f32 %v3329_v15, %v1987_v32  ;;  %v1993_v48 = vpop.permute.xlu1 %1992 }
 0x9b9   :  { %2114 = vmatprep.subr.bf16.mxu1 %v3330_v53  ;;  %v2001_v44 = vmul.f32 %v3329_v15, %v1993_v48 }
 0x9bb   :  { %v1991_v49 = vpop.permute.xlu0 %1990 }
 0x9bc   :  { %2115 = vmatpush1.bf16.msra.mxu1 %v2008_v41  ;;  %v1999_v41 = vmul.f32 %v3329_v15, %v1989_v29 }
 0x9bd   :  { %2116 = vmatprep.subr.bf16.mxu1 %v3330_v53 }
 0x9be   :  { %v2012_v42 = vpack.c.bf16 %v1999_v41, %v1998_v47 }
 0x9c0   :  { %2117 = vmatpush1.bf16.msra.mxu1 %v2009_v46  ;;  %v2000_v46 = vmul.f32 %v3329_v15, %v1991_v49 }
 0x9c1   :  { %2118 = vmatprep.subr.bf16.mxu1 %v3330_v53 }
 0x9c2   :  { %v2013_v50 = vpack.c.bf16 %v2001_v44, %v2000_v46 }
 0x9c4   :  { %2119 = vmatpush1.bf16.msra.mxu1 %v2010_v35 }
 0x9c5   :  { %2120 = vmatprep.subr.bf16.mxu1 %v3330_v53 }
 0x9c8   :  { %2121 = vmatpush1.bf16.msra.mxu1 %v2011_v39 }
 0x9c9   :  { %2122 = vmatprep.subr.bf16.mxu1 %v3330_v53  ;;  %v2022_v25 = vpop.permute.xlu1 %2021 }
 0x9cc   :  { %2123 = vmatpush1.bf16.msra.mxu1 %v2012_v42  ;;  %v2017_v57 = vpop.permute.xlu0 %2016 }
 0x9cd   :  { %2124 = vmatprep.subr.bf16.mxu1 %v3330_v53  ;;  %v3254_v53 = vld [vmem:[%s4225_s15 + $0x24] ss:$8 sps:$4 sm:$0xff]   ;;  %v2032_v60 = vpop.permute.xlu1 %2031 }
 0x9d0   :  { %2125 = vmatpush1.bf16.msra.mxu1 %v2013_v50  ;;  %v2027_v11 = vpop.permute.xlu0 %2026 }
 0x9d1   :  { %v2042_v33 = vpop.permute.xlu1 %2041 }
 0x9d3   :  { %2135 = vmatmul.mubr.bf16.vlgmr.msra.gmra.mrb[44].mxu1 %v3248_v51 }
 0x9d4   :  { %2430 = vmatprep.mubr.msk.bf16.mxu1 %vm284_vm0, %v3251_v52  ;;  %v2037_v61 = vpop.permute.xlu0 %2036 }
 0x9d5   :  { %v2052_v0 = vpop.permute.xlu1 %2051 }
 0x9d8   :  { %v2047_v24 = vpop.permute.xlu0 %2046 }
 0x9d9   :  { %v2193_v2 = vpop.permute.xlu1 %2192 }
 0x9da   :  { %v2296_v31 = vadd.f32 %v4096_v59, %v2193_v2 }
 0x9db   :  { %2143 = vmatmul.mubr.bf16.gmra.mrb[48].mxu1 %v3253_v54 }
 0x9dc   :  { %2431 = vmatprep.mubr.msk.bf16.mxu1 %vm284_vm0, %v3254_v53  ;;  %v2188_v1 = vpop.permute.xlu0 %2187 }
 0x9dd   :  { %v2293_v3 = vadd.f32 %v4086_v9, %v2188_v1  ;;  %v2203_v19 = vpop.permute.xlu1 %2202 }
 0x9de   :  { %v2304_v17 = vadd.f32 %v4088_v56, %v2203_v19 }
 0x9e0   :  { %v2198_v16 = vpop.permute.xlu0 %2197 }
 0x9e1   :  { %v2301_v45 = vadd.f32 %v4081_v26, %v2198_v16  ;;  %v2213_v40 = vpop.permute.xlu1 %2212 }
 0x9e2   :  { %v2312_v29 = vadd.f32 %v4116_v63, %v2213_v40 }
 0x9e3   :  { %2151 = vmatmul.mubr.bf16.gmra.mrb[52].mxu1 %v3256_v55 }
 0x9e4   :  { %2432 = vmatprep.mubr.msk.bf16.mxu1 %vm284_vm0, %v3257_v14  ;;  %v2208_v37 = vpop.permute.xlu0 %2207 }
 0x9e5   :  { %v2309_v15 = vadd.f32 %v4106_v27, %v2208_v37  ;;  %v2223_v41 = vpop.permute.xlu1 %2222 }
 0x9e6   :  { %v2320_v42 = vadd.f32 %v4111_v62, %v2223_v41 }
 0x9e8   :  { %v2218_v39 = vpop.permute.xlu0 %2217 }
 0x9e9   :  { %v2317_v47 = vadd.f32 %v4101_v30, %v2218_v39 }
 0x9eb   :  { %2159 = vmatmul.mubr.bf16.gmra.mrb[56].mxu1 %v3259_v10 }
 0xaa6   :  { %v2136_v4 = vpop.f32.mrb[44].mxu1 }
 0xaa7   :  { %v2137_v5 = vadd.f32 %v2136_v4, %v2017_v57  ;;  %v2138_v36 = vpop.f32.mrb[45].mxu1 }
 0xaa8   :  { %v2139_v58 = vpop.f32.mrb[46].mxu1 }
 0xaa9   :  { %v2323_v8 = vadd.f32 %v2293_v3, %v2137_v5  ;;  %v2140_v13 = vadd.f32 %v2139_v58, %v2022_v25  ;;  %v2141_v6 = vpop.f32.mrb[47].mxu1 }
 0xaab   :  { %2331 = vst [vmem:[%s4227_s19] sm:$0xff] %v2323_v8  ;;  %v2324_v7 = vadd.f32 %v2296_v31, %v2140_v13 }
 0xaad   :  { %2332 = vst [vmem:[%s4227_s19 + $0x8] sm:$0xff] %v2324_v7 }
 0xaae   :  { %v2144_v9 = vpop.f32.mrb[48].mxu1 }
 0xaaf   :  { %v2145_v12 = vadd.f32 %v2144_v9, %v2027_v11  ;;  %v2146_v22 = vpop.f32.mrb[49].mxu1 }
 0xab0   :  { %v2147_v59 = vpop.f32.mrb[50].mxu1 }
 0xab1   :  { %v2325_v20 = vadd.f32 %v2301_v45, %v2145_v12  ;;  %v2148_v21 = vadd.f32 %v2147_v59, %v2032_v60  ;;  %v2149_v28 = vpop.f32.mrb[51].mxu1 }
 0xab3   :  { %2333 = vst [vmem:[%s4227_s19 + $0x10] sm:$0xff] %v2325_v20  ;;  %v2326_v34 = vadd.f32 %v2304_v17, %v2148_v21 }
 0xab5   :  { %2334 = vst [vmem:[%s4227_s19 + $0x18] sm:$0xff] %v2326_v34 }
 0xab6   :  { %v2152_v26 = vpop.f32.mrb[52].mxu1 }
 0xab7   :  { %v2153_v18 = vadd.f32 %v2152_v26, %v2037_v61  ;;  %v2154_v23 = vpop.f32.mrb[53].mxu1 }
 0xab8   :  { %v2155_v56 = vpop.f32.mrb[54].mxu1 }
 0xab9   :  { %v2327_v32 = vadd.f32 %v2309_v15, %v2153_v18  ;;  %v2156_v35 = vadd.f32 %v2155_v56, %v2042_v33  ;;  %v2157_v43 = vpop.f32.mrb[55].mxu1 }
 0xabb   :  { %2335 = vst [vmem:[%s4227_s19 + $0x20] sm:$0xff] %v2327_v32  ;;  %v2328_v38 = vadd.f32 %v2312_v29, %v2156_v35 }
 0xabd   :  { %2336 = vst [vmem:[%s4227_s19 + $0x28] sm:$0xff] %v2328_v38 }
 0xabe   :  { %v2160_v27 = vpop.f32.mrb[56].mxu1 }
 0xabf   :  { %v2161_v48 = vadd.f32 %v2160_v27, %v2047_v24  ;;  %v2162_v49 = vpop.f32.mrb[57].mxu1 }
 0xac0   :  { %v2163_v63 = vpop.f32.mrb[58].mxu1 }
 0xac1   :  { %v2329_v44 = vadd.f32 %v2317_v47, %v2161_v48  ;;  %v2164_v46 = vadd.f32 %v2163_v63, %v2052_v0  ;;  %v2165_v50 = vpop.f32.mrb[59].mxu1 }
 0xac3   :  { %2337 = vst [vmem:[%s4227_s19 + $0x30] sm:$0xff] %v2329_v44  ;;  %v2330_v51 = vadd.f32 %v2320_v42, %v2164_v46 }
 0xac5   :  { %2338 = vst [vmem:[%s4227_s19 + $0x38] sm:$0xff] %v2330_v51 }

</bundles_post_ra>
